<compile_context>
chip_gen: v6e
topology: v6e:2x2x1
jax: 0.10.0
libtpu: 0.0.40
codegen_flags: <defaults>
</compile_context>

<pallas_src>
import jax
import jax.numpy as jnp
from jax.experimental import pallas as pl
from jax.experimental.pallas import tpu as pltpu

LAST_CONV_SPATIAL = (4, 4)
BN_EPS = 1e-5


def _ceil_mult(x, m):
    return -(-x // m) * m


def _pick_tile(n, candidates):
    for t in candidates:
        if t <= n and n % t == 0:
            return t
    return n


# ----------------------------- Pallas kernels --------------------------------

def _matmul_kernel(a_ref, b_ref, o_ref):
    o_ref[...] = jnp.dot(a_ref[...], b_ref[...],
                         preferred_element_type=jnp.float32)


def pallas_matmul_f32(a, b):
    """(M, K) @ (K, N) -> (M, N) f32.  Operands already padded, bf16."""
    M, K = a.shape
    _, N = b.shape
    tn = _pick_tile(N, (256, 128))
    return pl.pallas_call(
        _matmul_kernel,
        out_shape=jax.ShapeDtypeStruct((M, N), jnp.float32),
        grid=(N // tn,),
        in_specs=[
            pl.BlockSpec((M, K), lambda j: (0, 0)),
            pl.BlockSpec((K, tn), lambda j: (0, j)),
        ],
        out_specs=pl.BlockSpec((M, tn), lambda j: (0, j)),
        compiler_params=pltpu.CompilerParams(
            dimension_semantics=("parallel",)),
    )(a, b)


def _matmul_bias_tanh_kernel(a_ref, b_ref, bias_ref, o_ref):
    acc = jnp.dot(a_ref[...], b_ref[...], preferred_element_type=jnp.float32)
    o_ref[...] = jnp.tanh(acc + bias_ref[...])


def pallas_matmul_bias_tanh(a, b, bias):
    """Fused (M,K)@(K,N) + bias + tanh (final 1x1 ConvTranspose + tanh)."""
    M, K = a.shape
    _, N = b.shape
    tm = _pick_tile(M, (512, 256, 128, 64, 32, 16, 8))
    return pl.pallas_call(
        _matmul_bias_tanh_kernel,
        out_shape=jax.ShapeDtypeStruct((M, N), jnp.float32),
        grid=(M // tm,),
        in_specs=[
            pl.BlockSpec((tm, K), lambda i: (i, 0)),
            pl.BlockSpec((K, N), lambda i: (0, 0)),
            pl.BlockSpec((1, N), lambda i: (0, 0)),
        ],
        out_specs=pl.BlockSpec((tm, N), lambda i: (i, 0)),
        compiler_params=pltpu.CompilerParams(
            dimension_semantics=("parallel",)),
    )(a, b, bias)


def _scale_shift_elu_kernel(x_ref, s_ref, t_ref, o_ref):
    # f32 math inside the kernel even when activations are stored as bf16.
    y = x_ref[...].astype(jnp.float32) * s_ref[...] + t_ref[...]
    # ELU(alpha=1.0)
    o_ref[...] = jnp.where(
        y > 0, y, jnp.exp(jnp.minimum(y, 0.0)) - 1.0).astype(o_ref.dtype)


def pallas_scale_shift_elu(x2d, scale_cols, shift_cols,
                           out_dtype=jnp.bfloat16):
    """y = ELU(x * scale + shift) with per-column scale/shift (fused BN apply)."""
    R, C = x2d.shape
    tr = _pick_tile(R, (1024, 512, 256, 128, 64, 32, 16, 8))
    return pl.pallas_call(
        _scale_shift_elu_kernel,
        out_shape=jax.ShapeDtypeStruct((R, C), out_dtype),
        grid=(R // tr,),
        in_specs=[
            pl.BlockSpec((tr, C), lambda i: (i, 0)),
            pl.BlockSpec((1, C), lambda i: (0, 0)),
            pl.BlockSpec((1, C), lambda i: (0, 0)),
        ],
        out_specs=pl.BlockSpec((tr, C), lambda i: (i, 0)),
        compiler_params=pltpu.CompilerParams(
            dimension_semantics=("parallel",)),
    )(x2d, scale_cols.reshape(1, C), shift_cols.reshape(1, C))


# -------------- Phase-decomposed ConvTranspose2d (k=4, s=2, p=1) -------------
#
# y[b, 2m+ph, 2n+pw, o] = sum_{c,a,b'} x[b, m+ph-a, n+pw-b', c]
#                                      * w[c, o, 2a+1-ph, 2b'+1-pw]
# With Pc[b, i, n, j*Cin+c] = xpad[b, i, n+j, c] (j in {0,1,2}, xpad = 1-pad),
# each (ph, a) contribution is a single (H*W, 3Cin) @ (3Cin, 2Cout) matmul
# using the row slab r = 1+ph-a of Pc; columns of the result are (pw, o).

def _make_convt_kernel(H, W, Cout):
    HW = H * W

    def kernel(pc_ref, wk_ref, y_ref, st_ref):
        outs = []
        for ph in range(2):
            acc = jnp.zeros((HW, 2 * Cout), jnp.float32)
            for a in range(2):
                r = 1 + ph - a                         # row shift into padded input
                slab = pc_ref[r * W:r * W + HW, :]     # (HW, 3*Cin) bf16
                acc = acc + jnp.dot(slab, wk_ref[ph, a],
                                    preferred_element_type=jnp.float32)
            outs.append(acc)
        y_full = jnp.concatenate(outs, axis=-1)        # (HW, 4*Cout) f32
        y_ref[...] = y_full.astype(y_ref.dtype)
        # fused per-column BatchNorm partial statistics
        s1 = jnp.sum(y_full, axis=0, keepdims=True)
        s2 = jnp.sum(y_full * y_full, axis=0, keepdims=True)
        st_ref[...] = jnp.concatenate([s1, s2], axis=0)

    return kernel


def pallas_convt_s2p1(x_nhwc, wk):
    """ConvTranspose2d(Cin, Cout, 4, stride=2, padding=1, bias=False).

    x_nhwc: (B, H, W, Cin) bf16.  wk: (2, 2, 3*Cin, 2*Cout) bf16 (prepared).
    Returns y: (B, H*W, 4*Cout) bf16 with columns ordered (ph, pw, cout) and
    per-batch column sums / sums-of-squares st: (B, 2, 4*Cout) f32.
    """
    B, H, W, Cin = x_nhwc.shape
    Cout = wk.shape[-1] // 2
    xp = jnp.pad(x_nhwc, ((0, 0), (1, 1), (1, 1), (0, 0)))
    # Pc[b, i, n, j*Cin + c] = xpad[b, i, n + j, c]  (3 column shifts, bf16)
    pc = jnp.concatenate([xp[:, :, j:j + W, :] for j in range(3)], axis=-1)
    pc = pc.reshape(B, (H + 2) * W, 3 * Cin)

    kernel = _make_convt_kernel(H, W, Cout)
    y, st = pl.pallas_call(
        kernel,
        out_shape=(
            jax.ShapeDtypeStruct((B, H * W, 4 * Cout), jnp.bfloat16),
            jax.ShapeDtypeStruct((B, 2, 4 * Cout), jnp.float32),
        ),
        grid=(B,),
        in_specs=[
            pl.BlockSpec((None, (H + 2) * W, 3 * Cin), lambda b: (b, 0, 0)),
            pl.BlockSpec((2, 2, 3 * Cin, 2 * Cout), lambda b: (0, 0, 0, 0)),
        ],
        out_specs=(
            pl.BlockSpec((None, H * W, 4 * Cout), lambda b: (b, 0, 0)),
            pl.BlockSpec((None, 2, 4 * Cout), lambda b: (b, 0, 0)),
        ),
        compiler_params=pltpu.CompilerParams(
            dimension_semantics=("parallel",)),
    )(pc, wk)
    return y, st


# --------------------------- Weight preparation -------------------------------

def _prep_convt_weight(w):
    """(Cin, Cout, 4, 4) PyTorch ConvT weight -> (2, 2, 3*Cin, 2*Cout) bf16."""
    Cin, Cout = w.shape[0], w.shape[1]
    wk = jnp.zeros((2, 2, 3 * Cin, 2 * Cout), jnp.float32)
    for ph in range(2):
        for a in range(2):
            kh = 2 * a + 1 - ph
            for pw in range(2):
                for j in (pw, pw + 1):
                    kw = 3 + pw - 2 * j
                    wk = wk.at[ph, a,
                               j * Cin:(j + 1) * Cin,
                               pw * Cout:(pw + 1) * Cout].set(w[:, :, kh, kw])
    return wk.astype(jnp.bfloat16)


def prepare_params(params):
    """One-time weight preprocessing (reshape / phase-split / pad / bf16)."""
    w0 = params["w0"]                                   # (latent, f0, 4, 4)
    latent, f0 = w0.shape[0], w0.shape[1]
    w0m = w0.transpose(0, 2, 3, 1).reshape(latent, 16 * f0)
    kp = _ceil_mult(latent, 128)
    np0 = _ceil_mult(16 * f0, 128)
    prep = {
        "w0": jnp.pad(w0m, ((0, kp - latent),
                            (0, np0 - 16 * f0))).astype(jnp.bfloat16),
        "g0": params["g0"].astype(jnp.float32),
        "b0": params["b0"].astype(jnp.float32),
        "blocks": [
            (_prep_convt_weight(w), g.astype(jnp.float32),
             b.astype(jnp.float32))
            for (w, g, b) in params["blocks"]
        ],
    }
    wl = params["w_last"][:, :, 0, 0]                   # (F, c)
    F, c = wl.shape
    kpl = _ceil_mult(F, 8)
    npl = _ceil_mult(c, 128)
    prep["w_last"] = jnp.pad(
        wl, ((0, kpl - F), (0, npl - c))).astype(jnp.bfloat16)
    prep["b_last"] = params["b_last"].astype(jnp.float32)   # (c,)
    return prep


# ------------------------------ Generator ------------------------------------

def init_params(key, latent_dim, output_spatial, last_layer_n_features):
    """Deterministic synthetic parameters matching Generator.__init__ shapes."""
    c, h, w = output_spatial
    LH, LW = LAST_CONV_SPATIAL
    f = last_layer_n_features * (w // LW)
    keys = iter(jax.random.split(key, 64))
    params = {
        "w0": 0.1 * jax.random.normal(next(keys), (latent_dim, f, LW, LW), jnp.float32),
        "g0": 1.0 + 0.1 * jax.random.normal(next(keys), (f,), jnp.float32),
        "b0": 0.05 * jax.random.normal(next(keys), (f,), jnp.float32),
    }
    blocks = []
    ih, iw = LH, LW
    while ih < h and iw < w:
        w_k = 0.1 * jax.random.normal(next(keys), (f, f >> 1, 4, 4), jnp.float32)
        g_k = 1.0 + 0.1 * jax.random.normal(next(keys), (f >> 1,), jnp.float32)
        b_k = 0.05 * jax.random.normal(next(keys), (f >> 1,), jnp.float32)
        blocks.append((w_k, g_k, b_k))
        f >>= 1
        ih <<= 1
        iw <<= 1
    params["blocks"] = blocks
    params["w_last"] = 0.1 * jax.random.normal(next(keys), (f, c, 1, 1), jnp.float32)
    params["b_last"] = 0.05 * jax.random.normal(next(keys), (c,), jnp.float32)
    return params


def _bn_scale_shift(sums, sumsqs, count, gamma, beta):
    mean = sums / count
    var = jnp.maximum(sumsqs / count - mean * mean, 0.0)   # biased (train mode)
    scale = gamma * jax.lax.rsqrt(var + BN_EPS)
    shift = beta - mean * scale
    return scale, shift


def generator_forward(z, prep):
    """Pallas implementation of Generator.forward.  z: (B, latent) -> NCHW."""
    B, latent = z.shape
    f0 = prep["g0"].shape[0]
    n0 = 16 * f0

    # Layer 0: ConvTranspose2d(latent, f0, 4, s=1, p=0) on a 1x1 input == matmul.
    kp, np0 = prep["w0"].shape
    mp = _ceil_mult(B, 8)
    zp = jnp.pad(z.astype(jnp.bfloat16), ((0, mp - B), (0, kp - latent)))
    y0 = pallas_matmul_f32(zp, prep["w0"])                 # (mp, np0) f32
    # TODO(synk): cross-batch BN stat reduction + parity interleave stay in XLA
    # glue (tiny); everything compute-heavy runs in the Pallas kernels.
    y0r = y0[:B, :n0].reshape(B, 16, f0)
    scale, shift = _bn_scale_shift(
        jnp.sum(y0r, axis=(0, 1)), jnp.sum(y0r * y0r, axis=(0, 1)),
        float(B * 16), prep["g0"], prep["b0"])
    scale_c = jnp.pad(jnp.tile(scale, 16), (0, np0 - n0))
    shift_c = jnp.pad(jnp.tile(shift, 16), (0, np0 - n0))
    a0 = pallas_scale_shift_elu(y0, scale_c, shift_c)      # (mp, np0) bf16
    x = a0[:B, :n0].reshape(B, 4, 4, f0)                   # NHWC bf16

    # Upsampling blocks: phase-decomposed ConvT(k4,s2,p1) -> BN -> ELU.
    for (wk, g, beta) in prep["blocks"]:
        _, H, W, _ = x.shape
        Cout = wk.shape[-1] // 2
        y, st = pallas_convt_s2p1(x, wk)                   # fused conv + stats
        sums = jnp.sum(st[:, 0, :].reshape(B, 4, Cout), axis=(0, 1))
        sqs = jnp.sum(st[:, 1, :].reshape(B, 4, Cout), axis=(0, 1))
        scale, shift = _bn_scale_shift(sums, sqs, float(B * H * W * 4), g, beta)
        yn = pallas_scale_shift_elu(
            y.reshape(B * H * W, 4 * Cout), jnp.tile(scale, 4), jnp.tile(shift, 4))
        # depth-to-space: columns (ph, pw, c) -> output spatial parities
        x = yn.reshape(B, H, W, 2, 2, Cout).transpose(0, 1, 3, 2, 4, 5)
        x = x.reshape(B, 2 * H, 2 * W, Cout)

    # Final ConvTranspose2d(F, c, 1) with bias (per-pixel matmul) + tanh.
    B_, H, W, F = x.shape
    kpl, npl = prep["w_last"].shape
    c = prep["b_last"].shape[0]
    a = jnp.pad(x.reshape(B_ * H * W, F), ((0, 0), (0, kpl - F)))
    bias = jnp.pad(prep["b_last"], (0, npl - c)).reshape(1, npl)
    out = pallas_matmul_bias_tanh(a, prep["w_last"], bias)  # (B*H*W, npl) f32
    out = out[:, :c].reshape(B_, H, W, c).transpose(0, 3, 1, 2)  # NCHW boundary
    return out


# -------------------------- Pure-JAX reference -------------------------------

def _ref_conv_transpose(x, w, stride, padding):
    k = w.shape[2]
    rhs = jnp.flip(w, axis=(2, 3)).transpose(1, 0, 2, 3)    # (Cout, Cin, k, k)
    pad = k - 1 - padding
    return jax.lax.conv_general_dilated(
        x, rhs, window_strides=(1, 1), padding=[(pad, pad), (pad, pad)],
        lhs_dilation=(stride, stride),
        dimension_numbers=("NCHW", "OIHW", "NCHW"),
        precision=jax.lax.Precision.HIGHEST)


def _ref_bn_elu(x, gamma, beta):
    mean = x.mean(axis=(0, 2, 3), keepdims=True)
    var = ((x - mean) ** 2).mean(axis=(0, 2, 3), keepdims=True)
    xhat = (x - mean) / jnp.sqrt(var + BN_EPS)
    y = gamma.reshape(1, -1, 1, 1) * xhat + beta.reshape(1, -1, 1, 1)
    return jnp.where(y > 0, y, jnp.expm1(y))


def ref_forward(z, params):
    x = z.reshape(z.shape[0], -1, 1, 1)
    x = _ref_conv_transpose(x, params["w0"], 1, 0)
    x = _ref_bn_elu(x, params["g0"], params["b0"])
    for (w, g, b) in params["blocks"]:
        x = _ref_conv_transpose(x, w, 2, 1)
        x = _ref_bn_elu(x, g, b)
    wl = params["w_last"][:, :, 0, 0]
    y = jnp.einsum("bchw,cd->bdhw", x, wl,
                   precision=jax.lax.Precision.HIGHEST)
    y = y + params["b_last"].reshape(1, -1, 1, 1)
    return jnp.tanh(y)


# ----------------------------------- main -------------------------------------

if __name__ == "__main__":
    latent_dim = 16
    output_spatial = (3, 16, 16)       # small (c, h, w) consistent with the module
    last_features = 8
    batch = 2

    key = jax.random.PRNGKey(0)
    k_params, k_z = jax.random.split(key)
    params = init_params(k_params, latent_dim, output_spatial, last_features)
    z = jax.random.normal(k_z, (batch, latent_dim), jnp.float32)

    prep = prepare_params(params)            # one-time weight preprocessing
    fwd = jax.jit(generator_forward)
    out = jax.block_until_ready(fwd(z, prep))

    assert out.shape == (batch,) + output_spatial, out.shape
    assert bool(jnp.all(jnp.isfinite(out)))

    ref = jax.block_until_ready(ref_forward(z, params))
    max_err = float(jnp.max(jnp.abs(out - ref)))
    assert max_err < 3e-2, f"max abs error vs reference: {max_err}"

    print("KERNEL_OK")
</pallas_src>

<mosaic_0001>
module attributes {stable_mosaic.version = 11 : i64} {
  func.func @_matmul_kernel(%arg0: i32, %arg1: memref<8x128xbf16, #tpu.memory_space<vmem>>, %arg2: memref<128x256xbf16, #tpu.memory_space<vmem>>, %arg3: memref<8x256xf32, #tpu.memory_space<vmem>>) attributes {dimension_semantics = [#tpu.dimension_semantics<parallel>], iteration_bounds = array<i64: 2>, scalar_prefetch = 0 : i64, scratch_operands = 0 : i64, tpu.core_type = #tpu.core_type<tc>, window_params = [{pipeline_mode = #tpu.pipeline_mode<synchronous>, transform_indices = @transform_0, window_bounds = array<i64: 8, 128>}, {transform_indices = @transform_1, window_bounds = array<i64: 128, 256>}, {transform_indices = @transform_2, window_bounds = array<i64: 8, 256>}]} {
    %c0 = arith.constant 0 : index
    %c0_0 = arith.constant 0 : index
    %0 = vector.load %arg1[%c0, %c0_0] : memref<8x128xbf16, #tpu.memory_space<vmem>>, vector<8x128xbf16>
    %c0_1 = arith.constant 0 : index
    %c0_2 = arith.constant 0 : index
    %1 = vector.load %arg2[%c0_1, %c0_2] : memref<128x256xbf16, #tpu.memory_space<vmem>>, vector<128x256xbf16>
    %cst = arith.constant dense<0.000000e+00> : vector<8x256xf32>
    %2 = tpu.matmul %0, %1, %cst {dimension_numbers = #tpu.dot_dimension_numbers<[1], [0], [0], [1], [0, 0, 1, 1], [], []>} : vector<8x128xbf16>, vector<128x256xbf16>, vector<8x256xf32> -> vector<8x256xf32>
    %c0_3 = arith.constant 0 : index
    %c0_4 = arith.constant 0 : index
    %3 = vector.load %arg3[%c0_3, %c0_4] : memref<8x256xf32, #tpu.memory_space<vmem>>, vector<8x256xf32>
    tpu.vector_store %arg3[%c0_3, %c0_4], %2 {strides = array<i32>} : memref<8x256xf32, #tpu.memory_space<vmem>>, vector<8x256xf32>,
    return
  }
  func.func @transform_0(%arg0: i32) -> (i32, i32) {
    %c0_i32 = arith.constant 0 : i32
    %c0_i32_0 = arith.constant 0 : i32
    %c0_i32_1 = arith.constant 0 : i32
    return %c0_i32, %c0_i32_0 : i32, i32
  }
  func.func @transform_1(%arg0: i32) -> (i32, i32) {
    %c0_i32 = arith.constant 0 : i32
    %c0_i32_0 = arith.constant 0 : i32
    return %c0_i32, %arg0 : i32, i32
  }
  func.func @transform_2(%arg0: i32) -> (i32, i32) {
    %c0_i32 = arith.constant 0 : i32
    %c0_i32_0 = arith.constant 0 : i32
    return %c0_i32, %arg0 : i32, i32
  }
}

module attributes {stable_mosaic.version = 11 : i64} {
  func.func @_scale_shift_elu_kernel(%arg0: i32, %arg1: memref<8x512xf32, #tpu.memory_space<vmem>>, %arg2: memref<1x512xf32, #tpu.memory_space<vmem>>, %arg3: memref<1x512xf32, #tpu.memory_space<vmem>>, %arg4: memref<8x512xbf16, #tpu.memory_space<vmem>>) attributes {dimension_semantics = [#tpu.dimension_semantics<parallel>], iteration_bounds = array<i64: 1>, scalar_prefetch = 0 : i64, scratch_operands = 0 : i64, tpu.core_type = #tpu.core_type<tc>, window_params = [{transform_indices = @transform_0, window_bounds = array<i64: 8, 512>}, {pipeline_mode = #tpu.pipeline_mode<synchronous>, transform_indices = @transform_1, window_bounds = array<i64: 1, 512>}, {pipeline_mode = #tpu.pipeline_mode<synchronous>, transform_indices = @transform_2, window_bounds = array<i64: 1, 512>}, {transform_indices = @transform_3, window_bounds = array<i64: 8, 512>}]} {
    %c0 = arith.constant 0 : index
    %c0_0 = arith.constant 0 : index
    %0 = vector.load %arg1[%c0, %c0_0] : memref<8x512xf32, #tpu.memory_space<vmem>>, vector<8x512xf32>
    %c0_1 = arith.constant 0 : index
    %c0_2 = arith.constant 0 : index
    %1 = vector.load %arg2[%c0_1, %c0_2] : memref<1x512xf32, #tpu.memory_space<vmem>>, vector<1x512xf32>
    %2 = vector.broadcast %1 : vector<1x512xf32> to vector<8x512xf32>
    %3 = arith.mulf %0, %2 : vector<8x512xf32>
    %c0_3 = arith.constant 0 : index
    %c0_4 = arith.constant 0 : index
    %4 = vector.load %arg3[%c0_3, %c0_4] : memref<1x512xf32, #tpu.memory_space<vmem>>, vector<1x512xf32>
    %5 = vector.broadcast %4 : vector<1x512xf32> to vector<8x512xf32>
    %6 = arith.addf %3, %5 : vector<8x512xf32>
    %cst = arith.constant 0.000000e+00 : f32
    %7 = vector.broadcast %cst : f32 to vector<8x512xf32>
    %8 = arith.cmpf ogt, %6, %7 : vector<8x512xf32>
    %cst_5 = arith.constant 0.000000e+00 : f32
    %9 = vector.broadcast %cst_5 : f32 to vector<8x512xf32>
    %10 = arith.minimumf %6, %9 : vector<8x512xf32>
    %11 = math.exp %10 : vector<8x512xf32>
    %cst_6 = arith.constant 1.000000e+00 : f32
    %12 = vector.broadcast %cst_6 : f32 to vector<8x512xf32>
    %13 = arith.subf %11, %12 : vector<8x512xf32>
    %14 = arith.select %8, %6, %13 : vector<8x512xi1>, vector<8x512xf32>
    %15 = arith.truncf %14 : vector<8x512xf32> to vector<8x512xbf16>
    %c0_7 = arith.constant 0 : index
    %c0_8 = arith.constant 0 : index
    %16 = vector.load %arg4[%c0_7, %c0_8] : memref<8x512xbf16, #tpu.memory_space<vmem>>, vector<8x512xbf16>
    tpu.vector_store %arg4[%c0_7, %c0_8], %15 {strides = array<i32>} : memref<8x512xbf16, #tpu.memory_space<vmem>>, vector<8x512xbf16>,
    return
  }
  func.func @transform_0(%arg0: i32) -> (i32, i32) {
    %c0_i32 = arith.constant 0 : i32
    %c0_i32_0 = arith.constant 0 : i32
    return %arg0, %c0_i32 : i32, i32
  }
  func.func @transform_1(%arg0: i32) -> (i32, i32) {
    %c0_i32 = arith.constant 0 : i32
    %c0_i32_0 = arith.constant 0 : i32
    %c0_i32_1 = arith.constant 0 : i32
    return %c0_i32, %c0_i32_0 : i32, i32
  }
  func.func @transform_2(%arg0: i32) -> (i32, i32) {
    %c0_i32 = arith.constant 0 : i32
    %c0_i32_0 = arith.constant 0 : i32
    %c0_i32_1 = arith.constant 0 : i32
    return %c0_i32, %c0_i32_0 : i32, i32
  }
  func.func @transform_3(%arg0: i32) -> (i32, i32) {
    %c0_i32 = arith.constant 0 : i32
    %c0_i32_0 = arith.constant 0 : i32
    return %arg0, %c0_i32 : i32, i32
  }
}

module attributes {stable_mosaic.version = 11 : i64} {
  func.func @kernel(%arg0: i32, %arg1: memref<1x24x96xbf16, #tpu.memory_space<vmem>>, %arg2: memref<2x2x96x32xbf16, #tpu.memory_space<vmem>>, %arg3: memref<1x16x64xbf16, #tpu.memory_space<vmem>>, %arg4: memref<1x2x64xf32, #tpu.memory_space<vmem>>) attributes {dimension_semantics = [#tpu.dimension_semantics<parallel>], iteration_bounds = array<i64: 2>, scalar_prefetch = 0 : i64, scratch_operands = 0 : i64, tpu.core_type = #tpu.core_type<tc>, window_params = [{transform_indices = @transform_0, window_bounds = array<i64: 1, 24, 96>}, {pipeline_mode = #tpu.pipeline_mode<synchronous>, transform_indices = @transform_1, window_bounds = array<i64: 2, 2, 96, 32>}, {transform_indices = @transform_2, window_bounds = array<i64: 1, 16, 64>}, {transform_indices = @transform_3, window_bounds = array<i64: 1, 2, 64>}]} {
    %cst = arith.constant 0.000000e+00 : f32
    %0 = vector.broadcast %cst : f32 to vector<16x32xf32>
    %c0 = arith.constant 0 : index
    %c4 = arith.constant 4 : index
    %c0_0 = arith.constant 0 : index
    %1 = vector.load %arg1[%c0, %c4, %c0_0] : memref<1x24x96xbf16, #tpu.memory_space<vmem>>, vector<1x16x96xbf16>
    %2 = vector.shape_cast %1 : vector<1x16x96xbf16> to vector<16x96xbf16>
    %c0_1 = arith.constant 0 : index
    %c0_2 = arith.constant 0 : index
    %c0_3 = arith.constant 0 : index
    %c0_4 = arith.constant 0 : index
    %3 = vector.load %arg2[%c0_1, %c0_2, %c0_3, %c0_4] : memref<2x2x96x32xbf16, #tpu.memory_space<vmem>>, vector<1x1x96x32xbf16>
    %4 = vector.shape_cast %3 : vector<1x1x96x32xbf16> to vector<96x32xbf16>
    %cst_5 = arith.constant dense<0.000000e+00> : vector<16x32xf32>
    %5 = tpu.matmul %2, %4, %cst_5 {dimension_numbers = #tpu.dot_dimension_numbers<[1], [0], [0], [1], [0, 0, 1, 1], [], []>} : vector<16x96xbf16>, vector<96x32xbf16>, vector<16x32xf32> -> vector<16x32xf32>
    %6 = arith.addf %0, %5 : vector<16x32xf32>
    %c0_6 = arith.constant 0 : index
    %c0_7 = arith.constant 0 : index
    %c0_8 = arith.constant 0 : index
    %7 = vector.load %arg1[%c0_6, %c0_7, %c0_8] : memref<1x24x96xbf16, #tpu.memory_space<vmem>>, vector<1x16x96xbf16>
    %8 = vector.shape_cast %7 : vector<1x16x96xbf16> to vector<16x96xbf16>
    %c0_9 = arith.constant 0 : index
    %c1 = arith.constant 1 : index
    %c0_10 = arith.constant 0 : index
    %c0_11 = arith.constant 0 : index
    %9 = vector.load %arg2[%c0_9, %c1, %c0_10, %c0_11] : memref<2x2x96x32xbf16, #tpu.memory_space<vmem>>, vector<1x1x96x32xbf16>
    %10 = vector.shape_cast %9 : vector<1x1x96x32xbf16> to vector<96x32xbf16>
    %cst_12 = arith.constant dense<0.000000e+00> : vector<16x32xf32>
    %11 = tpu.matmul %8, %10, %cst_12 {dimension_numbers = #tpu.dot_dimension_numbers<[1], [0], [0], [1], [0, 0, 1, 1], [], []>} : vector<16x96xbf16>, vector<96x32xbf16>, vector<16x32xf32> -> vector<16x32xf32>
    %12 = arith.addf %6, %11 : vector<16x32xf32>
    %cst_13 = arith.constant 0.000000e+00 : f32
    %13 = vector.broadcast %cst_13 : f32 to vector<16x32xf32>
    %c0_14 = arith.constant 0 : index
    %c8 = arith.constant 8 : index
    %c0_15 = arith.constant 0 : index
    %14 = vector.load %arg1[%c0_14, %c8, %c0_15] : memref<1x24x96xbf16, #tpu.memory_space<vmem>>, vector<1x16x96xbf16>
    %15 = vector.shape_cast %14 : vector<1x16x96xbf16> to vector<16x96xbf16>
    %c1_16 = arith.constant 1 : index
    %c0_17 = arith.constant 0 : index
    %c0_18 = arith.constant 0 : index
    %c0_19 = arith.constant 0 : index
    %16 = vector.load %arg2[%c1_16, %c0_17, %c0_18, %c0_19] : memref<2x2x96x32xbf16, #tpu.memory_space<vmem>>, vector<1x1x96x32xbf16>
    %17 = vector.shape_cast %16 : vector<1x1x96x32xbf16> to vector<96x32xbf16>
    %cst_20 = arith.constant dense<0.000000e+00> : vector<16x32xf32>
    %18 = tpu.matmul %15, %17, %cst_20 {dimension_numbers = #tpu.dot_dimension_numbers<[1], [0], [0], [1], [0, 0, 1, 1], [], []>} : vector<16x96xbf16>, vector<96x32xbf16>, vector<16x32xf32> -> vector<16x32xf32>
    %19 = arith.addf %13, %18 : vector<16x32xf32>
    %c0_21 = arith.constant 0 : index
    %c4_22 = arith.constant 4 : index
    %c0_23 = arith.constant 0 : index
    %20 = vector.load %arg1[%c0_21, %c4_22, %c0_23] : memref<1x24x96xbf16, #tpu.memory_space<vmem>>, vector<1x16x96xbf16>
    %21 = vector.shape_cast %20 : vector<1x16x96xbf16> to vector<16x96xbf16>
    %c1_24 = arith.constant 1 : index
    %c1_25 = arith.constant 1 : index
    %c0_26 = arith.constant 0 : index
    %c0_27 = arith.constant 0 : index
    %22 = vector.load %arg2[%c1_24, %c1_25, %c0_26, %c0_27] : memref<2x2x96x32xbf16, #tpu.memory_space<vmem>>, vector<1x1x96x32xbf16>
    %23 = vector.shape_cast %22 : vector<1x1x96x32xbf16> to vector<96x32xbf16>
    %cst_28 = arith.constant dense<0.000000e+00> : vector<16x32xf32>
    %24 = tpu.matmul %21, %23, %cst_28 {dimension_numbers = #tpu.dot_dimension_numbers<[1], [0], [0], [1], [0, 0, 1, 1], [], []>} : vector<16x96xbf16>, vector<96x32xbf16>, vector<16x32xf32> -> vector<16x32xf32>
    %25 = arith.addf %19, %24 : vector<16x32xf32>
    %26 = tpu.concatenate %12, %25 in 1 : vector<16x32xf32>, vector<16x32xf32> -> vector<16x64xf32>
    %27 = arith.truncf %26 : vector<16x64xf32> to vector<16x64xbf16>
    %c0_29 = arith.constant 0 : index
    %c0_30 = arith.constant 0 : index
    %c0_31 = arith.constant 0 : index
    %28 = vector.load %arg3[%c0_29, %c0_30, %c0_31] : memref<1x16x64xbf16, #tpu.memory_space<vmem>>, vector<1x16x64xbf16>
    %29 = vector.shape_cast %28 : vector<1x16x64xbf16> to vector<16x64xbf16>
    %30 = vector.shape_cast %27 : vector<16x64xbf16> to vector<1x16x64xbf16>
    tpu.vector_store %arg3[%c0_29, %c0_30, %c0_31], %30 {strides = array<i32>} : memref<1x16x64xbf16, #tpu.memory_space<vmem>>, vector<1x16x64xbf16>,
    %cst_32 = arith.constant dense<0.000000e+00> : vector<64xf32>
    %31 = vector.multi_reduction <add>, %26, %cst_32 [0] : vector<16x64xf32> to vector<64xf32>
    %32 = vector.shape_cast %31 : vector<64xf32> to vector<1x64xf32>
    %33 = arith.mulf %26, %26 : vector<16x64xf32>
    %cst_33 = arith.constant dense<0.000000e+00> : vector<64xf32>
    %34 = vector.multi_reduction <add>, %33, %cst_33 [0] : vector<16x64xf32> to vector<64xf32>
    %35 = vector.shape_cast %34 : vector<64xf32> to vector<1x64xf32>
    %36 = tpu.concatenate %32, %35 in 0 : vector<1x64xf32>, vector<1x64xf32> -> vector<2x64xf32>
    %c0_34 = arith.constant 0 : index
    %c0_35 = arith.constant 0 : index
    %c0_36 = arith.constant 0 : index
    %37 = vector.load %arg4[%c0_34, %c0_35, %c0_36] : memref<1x2x64xf32, #tpu.memory_space<vmem>>, vector<1x2x64xf32>
    %38 = vector.shape_cast %37 : vector<1x2x64xf32> to vector<2x64xf32>
    %39 = vector.shape_cast %36 : vector<2x64xf32> to vector<1x2x64xf32>
    tpu.vector_store %arg4[%c0_34, %c0_35, %c0_36], %39 {strides = array<i32>} : memref<1x2x64xf32, #tpu.memory_space<vmem>>, vector<1x2x64xf32>,
    return
  }
  func.func @transform_0(%arg0: i32) -> (i32, i32, i32) {
    %c0_i32 = arith.constant 0 : i32
    %c0_i32_0 = arith.constant 0 : i32
    %c0_i32_1 = arith.constant 0 : i32
    return %arg0, %c0_i32, %c0_i32_0 : i32, i32, i32
  }
  func.func @transform_1(%arg0: i32) -> (i32, i32, i32, i32) {
    %c0_i32 = arith.constant 0 : i32
    %c0_i32_0 = arith.constant 0 : i32
    %c0_i32_1 = arith.constant 0 : i32
    %c0_i32_2 = arith.constant 0 : i32
    %c0_i32_3 = arith.constant 0 : i32
    return %c0_i32, %c0_i32_0, %c0_i32_1, %c0_i32_2 : i32, i32, i32, i32
  }
  func.func @transform_2(%arg0: i32) -> (i32, i32, i32) {
    %c0_i32 = arith.constant 0 : i32
    %c0_i32_0 = arith.constant 0 : i32
    %c0_i32_1 = arith.constant 0 : i32
    return %arg0, %c0_i32, %c0_i32_0 : i32, i32, i32
  }
  func.func @transform_3(%arg0: i32) -> (i32, i32, i32) {
    %c0_i32 = arith.constant 0 : i32
    %c0_i32_0 = arith.constant 0 : i32
    %c0_i32_1 = arith.constant 0 : i32
    return %arg0, %c0_i32, %c0_i32_0 : i32, i32, i32
  }
}

module attributes {stable_mosaic.version = 11 : i64} {
  func.func @_scale_shift_elu_kernel(%arg0: i32, %arg1: memref<32x64xbf16, #tpu.memory_space<vmem>>, %arg2: memref<1x64xf32, #tpu.memory_space<vmem>>, %arg3: memref<1x64xf32, #tpu.memory_space<vmem>>, %arg4: memref<32x64xbf16, #tpu.memory_space<vmem>>) attributes {dimension_semantics = [#tpu.dimension_semantics<parallel>], iteration_bounds = array<i64: 1>, scalar_prefetch = 0 : i64, scratch_operands = 0 : i64, tpu.core_type = #tpu.core_type<tc>, window_params = [{transform_indices = @transform_0, window_bounds = array<i64: 32, 64>}, {pipeline_mode = #tpu.pipeline_mode<synchronous>, transform_indices = @transform_1, window_bounds = array<i64: 1, 64>}, {pipeline_mode = #tpu.pipeline_mode<synchronous>, transform_indices = @transform_2, window_bounds = array<i64: 1, 64>}, {transform_indices = @transform_3, window_bounds = array<i64: 32, 64>}]} {
    %c0 = arith.constant 0 : index
    %c0_0 = arith.constant 0 : index
    %0 = vector.load %arg1[%c0, %c0_0] : memref<32x64xbf16, #tpu.memory_space<vmem>>, vector<32x64xbf16>
    %1 = arith.extf %0 : vector<32x64xbf16> to vector<32x64xf32>
    %c0_1 = arith.constant 0 : index
    %c0_2 = arith.constant 0 : index
    %2 = vector.load %arg2[%c0_1, %c0_2] : memref<1x64xf32, #tpu.memory_space<vmem>>, vector<1x64xf32>
    %3 = vector.broadcast %2 : vector<1x64xf32> to vector<32x64xf32>
    %4 = arith.mulf %1, %3 : vector<32x64xf32>
    %c0_3 = arith.constant 0 : index
    %c0_4 = arith.constant 0 : index
    %5 = vector.load %arg3[%c0_3, %c0_4] : memref<1x64xf32, #tpu.memory_space<vmem>>, vector<1x64xf32>
    %6 = vector.broadcast %5 : vector<1x64xf32> to vector<32x64xf32>
    %7 = arith.addf %4, %6 : vector<32x64xf32>
    %cst = arith.constant 0.000000e+00 : f32
    %8 = vector.broadcast %cst : f32 to vector<32x64xf32>
    %9 = arith.cmpf ogt, %7, %8 : vector<32x64xf32>
    %cst_5 = arith.constant 0.000000e+00 : f32
    %10 = vector.broadcast %cst_5 : f32 to vector<32x64xf32>
    %11 = arith.minimumf %7, %10 : vector<32x64xf32>
    %12 = math.exp %11 : vector<32x64xf32>
    %cst_6 = arith.constant 1.000000e+00 : f32
    %13 = vector.broadcast %cst_6 : f32 to vector<32x64xf32>
    %14 = arith.subf %12, %13 : vector<32x64xf32>
    %15 = arith.select %9, %7, %14 : vector<32x64xi1>, vector<32x64xf32>
    %16 = arith.truncf %15 : vector<32x64xf32> to vector<32x64xbf16>
    %c0_7 = arith.constant 0 : index
    %c0_8 = arith.constant 0 : index
    %17 = vector.load %arg4[%c0_7, %c0_8] : memref<32x64xbf16, #tpu.memory_space<vmem>>, vector<32x64xbf16>
    tpu.vector_store %arg4[%c0_7, %c0_8], %16 {strides = array<i32>} : memref<32x64xbf16, #tpu.memory_space<vmem>>, vector<32x64xbf16>,
    return
  }
  func.func @transform_0(%arg0: i32) -> (i32, i32) {
    %c0_i32 = arith.constant 0 : i32
    %c0_i32_0 = arith.constant 0 : i32
    return %arg0, %c0_i32 : i32, i32
  }
  func.func @transform_1(%arg0: i32) -> (i32, i32) {
    %c0_i32 = arith.constant 0 : i32
    %c0_i32_0 = arith.constant 0 : i32
    %c0_i32_1 = arith.constant 0 : i32
    return %c0_i32, %c0_i32_0 : i32, i32
  }
  func.func @transform_2(%arg0: i32) -> (i32, i32) {
    %c0_i32 = arith.constant 0 : i32
    %c0_i32_0 = arith.constant 0 : i32
    %c0_i32_1 = arith.constant 0 : i32
    return %c0_i32, %c0_i32_0 : i32, i32
  }
  func.func @transform_3(%arg0: i32) -> (i32, i32) {
    %c0_i32 = arith.constant 0 : i32
    %c0_i32_0 = arith.constant 0 : i32
    return %arg0, %c0_i32 : i32, i32
  }
}

module attributes {stable_mosaic.version = 11 : i64} {
  func.func @kernel(%arg0: i32, %arg1: memref<1x80x48xbf16, #tpu.memory_space<vmem>>, %arg2: memref<2x2x48x16xbf16, #tpu.memory_space<vmem>>, %arg3: memref<1x64x32xbf16, #tpu.memory_space<vmem>>, %arg4: memref<1x2x32xf32, #tpu.memory_space<vmem>>) attributes {dimension_semantics = [#tpu.dimension_semantics<parallel>], iteration_bounds = array<i64: 2>, scalar_prefetch = 0 : i64, scratch_operands = 0 : i64, tpu.core_type = #tpu.core_type<tc>, window_params = [{transform_indices = @transform_0, window_bounds = array<i64: 1, 80, 48>}, {pipeline_mode = #tpu.pipeline_mode<synchronous>, transform_indices = @transform_1, window_bounds = array<i64: 2, 2, 48, 16>}, {transform_indices = @transform_2, window_bounds = array<i64: 1, 64, 32>}, {transform_indices = @transform_3, window_bounds = array<i64: 1, 2, 32>}]} {
    %cst = arith.constant 0.000000e+00 : f32
    %0 = vector.broadcast %cst : f32 to vector<64x16xf32>
    %c0 = arith.constant 0 : index
    %c8 = arith.constant 8 : index
    %c0_0 = arith.constant 0 : index
    %1 = vector.load %arg1[%c0, %c8, %c0_0] : memref<1x80x48xbf16, #tpu.memory_space<vmem>>, vector<1x64x48xbf16>
    %2 = vector.shape_cast %1 : vector<1x64x48xbf16> to vector<64x48xbf16>
    %c0_1 = arith.constant 0 : index
    %c0_2 = arith.constant 0 : index
    %c0_3 = arith.constant 0 : index
    %c0_4 = arith.constant 0 : index
    %3 = vector.load %arg2[%c0_1, %c0_2, %c0_3, %c0_4] : memref<2x2x48x16xbf16, #tpu.memory_space<vmem>>, vector<1x1x48x16xbf16>
    %4 = vector.shape_cast %3 : vector<1x1x48x16xbf16> to vector<48x16xbf16>
    %cst_5 = arith.constant dense<0.000000e+00> : vector<64x16xf32>
    %5 = tpu.matmul %2, %4, %cst_5 {dimension_numbers = #tpu.dot_dimension_numbers<[1], [0], [0], [1], [0, 0, 1, 1], [], []>} : vector<64x48xbf16>, vector<48x16xbf16>, vector<64x16xf32> -> vector<64x16xf32>
    %6 = arith.addf %0, %5 : vector<64x16xf32>
    %c0_6 = arith.constant 0 : index
    %c0_7 = arith.constant 0 : index
    %c0_8 = arith.constant 0 : index
    %7 = vector.load %arg1[%c0_6, %c0_7, %c0_8] : memref<1x80x48xbf16, #tpu.memory_space<vmem>>, vector<1x64x48xbf16>
    %8 = vector.shape_cast %7 : vector<1x64x48xbf16> to vector<64x48xbf16>
    %c0_9 = arith.constant 0 : index
    %c1 = arith.constant 1 : index
    %c0_10 = arith.constant 0 : index
    %c0_11 = arith.constant 0 : index
    %9 = vector.load %arg2[%c0_9, %c1, %c0_10, %c0_11] : memref<2x2x48x16xbf16, #tpu.memory_space<vmem>>, vector<1x1x48x16xbf16>
    %10 = vector.shape_cast %9 : vector<1x1x48x16xbf16> to vector<48x16xbf16>
    %cst_12 = arith.constant dense<0.000000e+00> : vector<64x16xf32>
    %11 = tpu.matmul %8, %10, %cst_12 {dimension_numbers = #tpu.dot_dimension_numbers<[1], [0], [0], [1], [0, 0, 1, 1], [], []>} : vector<64x48xbf16>, vector<48x16xbf16>, vector<64x16xf32> -> vector<64x16xf32>
    %12 = arith.addf %6, %11 : vector<64x16xf32>
    %cst_13 = arith.constant 0.000000e+00 : f32
    %13 = vector.broadcast %cst_13 : f32 to vector<64x16xf32>
    %c0_14 = arith.constant 0 : index
    %c16 = arith.constant 16 : index
    %c0_15 = arith.constant 0 : index
    %14 = vector.load %arg1[%c0_14, %c16, %c0_15] : memref<1x80x48xbf16, #tpu.memory_space<vmem>>, vector<1x64x48xbf16>
    %15 = vector.shape_cast %14 : vector<1x64x48xbf16> to vector<64x48xbf16>
    %c1_16 = arith.constant 1 : index
    %c0_17 = arith.constant 0 : index
    %c0_18 = arith.constant 0 : index
    %c0_19 = arith.constant 0 : index
    %16 = vector.load %arg2[%c1_16, %c0_17, %c0_18, %c0_19] : memref<2x2x48x16xbf16, #tpu.memory_space<vmem>>, vector<1x1x48x16xbf16>
    %17 = vector.shape_cast %16 : vector<1x1x48x16xbf16> to vector<48x16xbf16>
    %cst_20 = arith.constant dense<0.000000e+00> : vector<64x16xf32>
    %18 = tpu.matmul %15, %17, %cst_20 {dimension_numbers = #tpu.dot_dimension_numbers<[1], [0], [0], [1], [0, 0, 1, 1], [], []>} : vector<64x48xbf16>, vector<48x16xbf16>, vector<64x16xf32> -> vector<64x16xf32>
    %19 = arith.addf %13, %18 : vector<64x16xf32>
    %c0_21 = arith.constant 0 : index
    %c8_22 = arith.constant 8 : index
    %c0_23 = arith.constant 0 : index
    %20 = vector.load %arg1[%c0_21, %c8_22, %c0_23] : memref<1x80x48xbf16, #tpu.memory_space<vmem>>, vector<1x64x48xbf16>
    %21 = vector.shape_cast %20 : vector<1x64x48xbf16> to vector<64x48xbf16>
    %c1_24 = arith.constant 1 : index
    %c1_25 = arith.constant 1 : index
    %c0_26 = arith.constant 0 : index
    %c0_27 = arith.constant 0 : index
    %22 = vector.load %arg2[%c1_24, %c1_25, %c0_26, %c0_27] : memref<2x2x48x16xbf16, #tpu.memory_space<vmem>>, vector<1x1x48x16xbf16>
    %23 = vector.shape_cast %22 : vector<1x1x48x16xbf16> to vector<48x16xbf16>
    %cst_28 = arith.constant dense<0.000000e+00> : vector<64x16xf32>
    %24 = tpu.matmul %21, %23, %cst_28 {dimension_numbers = #tpu.dot_dimension_numbers<[1], [0], [0], [1], [0, 0, 1, 1], [], []>} : vector<64x48xbf16>, vector<48x16xbf16>, vector<64x16xf32> -> vector<64x16xf32>
    %25 = arith.addf %19, %24 : vector<64x16xf32>
    %26 = tpu.concatenate %12, %25 in 1 : vector<64x16xf32>, vector<64x16xf32> -> vector<64x32xf32>
    %27 = arith.truncf %26 : vector<64x32xf32> to vector<64x32xbf16>
    %c0_29 = arith.constant 0 : index
    %c0_30 = arith.constant 0 : index
    %c0_31 = arith.constant 0 : index
    %28 = vector.load %arg3[%c0_29, %c0_30, %c0_31] : memref<1x64x32xbf16, #tpu.memory_space<vmem>>, vector<1x64x32xbf16>
    %29 = vector.shape_cast %28 : vector<1x64x32xbf16> to vector<64x32xbf16>
    %30 = vector.shape_cast %27 : vector<64x32xbf16> to vector<1x64x32xbf16>
    tpu.vector_store %arg3[%c0_29, %c0_30, %c0_31], %30 {strides = array<i32>} : memref<1x64x32xbf16, #tpu.memory_space<vmem>>, vector<1x64x32xbf16>,
    %cst_32 = arith.constant dense<0.000000e+00> : vector<32xf32>
    %31 = vector.multi_reduction <add>, %26, %cst_32 [0] : vector<64x32xf32> to vector<32xf32>
    %32 = vector.shape_cast %31 : vector<32xf32> to vector<1x32xf32>
    %33 = arith.mulf %26, %26 : vector<64x32xf32>
    %cst_33 = arith.constant dense<0.000000e+00> : vector<32xf32>
    %34 = vector.multi_reduction <add>, %33, %cst_33 [0] : vector<64x32xf32> to vector<32xf32>
    %35 = vector.shape_cast %34 : vector<32xf32> to vector<1x32xf32>
    %36 = tpu.concatenate %32, %35 in 0 : vector<1x32xf32>, vector<1x32xf32> -> vector<2x32xf32>
    %c0_34 = arith.constant 0 : index
    %c0_35 = arith.constant 0 : index
    %c0_36 = arith.constant 0 : index
    %37 = vector.load %arg4[%c0_34, %c0_35, %c0_36] : memref<1x2x32xf32, #tpu.memory_space<vmem>>, vector<1x2x32xf32>
    %38 = vector.shape_cast %37 : vector<1x2x32xf32> to vector<2x32xf32>
    %39 = vector.shape_cast %36 : vector<2x32xf32> to vector<1x2x32xf32>
    tpu.vector_store %arg4[%c0_34, %c0_35, %c0_36], %39 {strides = array<i32>} : memref<1x2x32xf32, #tpu.memory_space<vmem>>, vector<1x2x32xf32>,
    return
  }
  func.func @transform_0(%arg0: i32) -> (i32, i32, i32) {
    %c0_i32 = arith.constant 0 : i32
    %c0_i32_0 = arith.constant 0 : i32
    %c0_i32_1 = arith.constant 0 : i32
    return %arg0, %c0_i32, %c0_i32_0 : i32, i32, i32
  }
  func.func @transform_1(%arg0: i32) -> (i32, i32, i32, i32) {
    %c0_i32 = arith.constant 0 : i32
    %c0_i32_0 = arith.constant 0 : i32
    %c0_i32_1 = arith.constant 0 : i32
    %c0_i32_2 = arith.constant 0 : i32
    %c0_i32_3 = arith.constant 0 : i32
    return %c0_i32, %c0_i32_0, %c0_i32_1, %c0_i32_2 : i32, i32, i32, i32
  }
  func.func @transform_2(%arg0: i32) -> (i32, i32, i32) {
    %c0_i32 = arith.constant 0 : i32
    %c0_i32_0 = arith.constant 0 : i32
    %c0_i32_1 = arith.constant 0 : i32
    return %arg0, %c0_i32, %c0_i32_0 : i32, i32, i32
  }
  func.func @transform_3(%arg0: i32) -> (i32, i32, i32) {
    %c0_i32 = arith.constant 0 : i32
    %c0_i32_0 = arith.constant 0 : i32
    %c0_i32_1 = arith.constant 0 : i32
    return %arg0, %c0_i32, %c0_i32_0 : i32, i32, i32
  }
}

module attributes {stable_mosaic.version = 11 : i64} {
  func.func @_scale_shift_elu_kernel(%arg0: i32, %arg1: memref<128x32xbf16, #tpu.memory_space<vmem>>, %arg2: memref<1x32xf32, #tpu.memory_space<vmem>>, %arg3: memref<1x32xf32, #tpu.memory_space<vmem>>, %arg4: memref<128x32xbf16, #tpu.memory_space<vmem>>) attributes {dimension_semantics = [#tpu.dimension_semantics<parallel>], iteration_bounds = array<i64: 1>, scalar_prefetch = 0 : i64, scratch_operands = 0 : i64, tpu.core_type = #tpu.core_type<tc>, window_params = [{transform_indices = @transform_0, window_bounds = array<i64: 128, 32>}, {pipeline_mode = #tpu.pipeline_mode<synchronous>, transform_indices = @transform_1, window_bounds = array<i64: 1, 32>}, {pipeline_mode = #tpu.pipeline_mode<synchronous>, transform_indices = @transform_2, window_bounds = array<i64: 1, 32>}, {transform_indices = @transform_3, window_bounds = array<i64: 128, 32>}]} {
    %c0 = arith.constant 0 : index
    %c0_0 = arith.constant 0 : index
    %0 = vector.load %arg1[%c0, %c0_0] : memref<128x32xbf16, #tpu.memory_space<vmem>>, vector<128x32xbf16>
    %1 = arith.extf %0 : vector<128x32xbf16> to vector<128x32xf32>
    %c0_1 = arith.constant 0 : index
    %c0_2 = arith.constant 0 : index
    %2 = vector.load %arg2[%c0_1, %c0_2] : memref<1x32xf32, #tpu.memory_space<vmem>>, vector<1x32xf32>
    %3 = vector.broadcast %2 : vector<1x32xf32> to vector<128x32xf32>
    %4 = arith.mulf %1, %3 : vector<128x32xf32>
    %c0_3 = arith.constant 0 : index
    %c0_4 = arith.constant 0 : index
    %5 = vector.load %arg3[%c0_3, %c0_4] : memref<1x32xf32, #tpu.memory_space<vmem>>, vector<1x32xf32>
    %6 = vector.broadcast %5 : vector<1x32xf32> to vector<128x32xf32>
    %7 = arith.addf %4, %6 : vector<128x32xf32>
    %cst = arith.constant 0.000000e+00 : f32
    %8 = vector.broadcast %cst : f32 to vector<128x32xf32>
    %9 = arith.cmpf ogt, %7, %8 : vector<128x32xf32>
    %cst_5 = arith.constant 0.000000e+00 : f32
    %10 = vector.broadcast %cst_5 : f32 to vector<128x32xf32>
    %11 = arith.minimumf %7, %10 : vector<128x32xf32>
    %12 = math.exp %11 : vector<128x32xf32>
    %cst_6 = arith.constant 1.000000e+00 : f32
    %13 = vector.broadcast %cst_6 : f32 to vector<128x32xf32>
    %14 = arith.subf %12, %13 : vector<128x32xf32>
    %15 = arith.select %9, %7, %14 : vector<128x32xi1>, vector<128x32xf32>
    %16 = arith.truncf %15 : vector<128x32xf32> to vector<128x32xbf16>
    %c0_7 = arith.constant 0 : index
    %c0_8 = arith.constant 0 : index
    %17 = vector.load %arg4[%c0_7, %c0_8] : memref<128x32xbf16, #tpu.memory_space<vmem>>, vector<128x32xbf16>
    tpu.vector_store %arg4[%c0_7, %c0_8], %16 {strides = array<i32>} : memref<128x32xbf16, #tpu.memory_space<vmem>>, vector<128x32xbf16>,
    return
  }
  func.func @transform_0(%arg0: i32) -> (i32, i32) {
    %c0_i32 = arith.constant 0 : i32
    %c0_i32_0 = arith.constant 0 : i32
    return %arg0, %c0_i32 : i32, i32
  }
  func.func @transform_1(%arg0: i32) -> (i32, i32) {
    %c0_i32 = arith.constant 0 : i32
    %c0_i32_0 = arith.constant 0 : i32
    %c0_i32_1 = arith.constant 0 : i32
    return %c0_i32, %c0_i32_0 : i32, i32
  }
  func.func @transform_2(%arg0: i32) -> (i32, i32) {
    %c0_i32 = arith.constant 0 : i32
    %c0_i32_0 = arith.constant 0 : i32
    %c0_i32_1 = arith.constant 0 : i32
    return %c0_i32, %c0_i32_0 : i32, i32
  }
  func.func @transform_3(%arg0: i32) -> (i32, i32) {
    %c0_i32 = arith.constant 0 : i32
    %c0_i32_0 = arith.constant 0 : i32
    return %arg0, %c0_i32 : i32, i32
  }
}

module attributes {stable_mosaic.version = 11 : i64} {
  func.func @_matmul_bias_tanh_kernel(%arg0: i32, %arg1: memref<512x8xbf16, #tpu.memory_space<vmem>>, %arg2: memref<8x128xbf16, #tpu.memory_space<vmem>>, %arg3: memref<1x128xf32, #tpu.memory_space<vmem>>, %arg4: memref<512x128xf32, #tpu.memory_space<vmem>>) attributes {dimension_semantics = [#tpu.dimension_semantics<parallel>], iteration_bounds = array<i64: 1>, scalar_prefetch = 0 : i64, scratch_operands = 0 : i64, tpu.core_type = #tpu.core_type<tc>, window_params = [{transform_indices = @transform_0, window_bounds = array<i64: 512, 8>}, {pipeline_mode = #tpu.pipeline_mode<synchronous>, transform_indices = @transform_1, window_bounds = array<i64: 8, 128>}, {pipeline_mode = #tpu.pipeline_mode<synchronous>, transform_indices = @transform_2, window_bounds = array<i64: 1, 128>}, {transform_indices = @transform_3, window_bounds = array<i64: 512, 128>}]} {
    %c0 = arith.constant 0 : index
    %c0_0 = arith.constant 0 : index
    %0 = vector.load %arg1[%c0, %c0_0] : memref<512x8xbf16, #tpu.memory_space<vmem>>, vector<512x8xbf16>
    %c0_1 = arith.constant 0 : index
    %c0_2 = arith.constant 0 : index
    %1 = vector.load %arg2[%c0_1, %c0_2] : memref<8x128xbf16, #tpu.memory_space<vmem>>, vector<8x128xbf16>
    %cst = arith.constant dense<0.000000e+00> : vector<512x128xf32>
    %2 = tpu.matmul %0, %1, %cst {dimension_numbers = #tpu.dot_dimension_numbers<[1], [0], [0], [1], [0, 0, 1, 1], [], []>} : vector<512x8xbf16>, vector<8x128xbf16>, vector<512x128xf32> -> vector<512x128xf32>
    %c0_3 = arith.constant 0 : index
    %c0_4 = arith.constant 0 : index
    %3 = vector.load %arg3[%c0_3, %c0_4] : memref<1x128xf32, #tpu.memory_space<vmem>>, vector<1x128xf32>
    %4 = vector.broadcast %3 : vector<1x128xf32> to vector<512x128xf32>
    %5 = arith.addf %2, %4 : vector<512x128xf32>
    %6 = math.tanh %5 : vector<512x128xf32>
    %c0_5 = arith.constant 0 : index
    %c0_6 = arith.constant 0 : index
    %7 = vector.load %arg4[%c0_5, %c0_6] : memref<512x128xf32, #tpu.memory_space<vmem>>, vector<512x128xf32>
    tpu.vector_store %arg4[%c0_5, %c0_6], %6 {strides = array<i32>} : memref<512x128xf32, #tpu.memory_space<vmem>>, vector<512x128xf32>,
    return
  }
  func.func @transform_0(%arg0: i32) -> (i32, i32) {
    %c0_i32 = arith.constant 0 : i32
    %c0_i32_0 = arith.constant 0 : i32
    return %arg0, %c0_i32 : i32, i32
  }
  func.func @transform_1(%arg0: i32) -> (i32, i32) {
    %c0_i32 = arith.constant 0 : i32
    %c0_i32_0 = arith.constant 0 : i32
    %c0_i32_1 = arith.constant 0 : i32
    return %c0_i32, %c0_i32_0 : i32, i32
  }
  func.func @transform_2(%arg0: i32) -> (i32, i32) {
    %c0_i32 = arith.constant 0 : i32
    %c0_i32_0 = arith.constant 0 : i32
    %c0_i32_1 = arith.constant 0 : i32
    return %c0_i32, %c0_i32_0 : i32, i32
  }
  func.func @transform_3(%arg0: i32) -> (i32, i32) {
    %c0_i32 = arith.constant 0 : i32
    %c0_i32_0 = arith.constant 0 : i32
    return %arg0, %c0_i32 : i32, i32
  }
}

</mosaic_0001>

<bundles_post_ra>
// kernel: tile.38
= control target key start
LH: loop header
LB: loop body
LE: loop exit
PB: predicated region body
PF: predicated region fallthrough
CT: control target
= control target key end

     0   :  { %s28_s0 = inlined_call_operand.vmem [shape: f32[32], index: 0, kind: input, shape index: {}]   ;;  %s29_s1 = inlined_call_operand.vmem [shape: f32[16,32], index: 1, kind: output, shape index: {}]  }
   0x1   :  { %v4_v0 = vld [vmem:[%s28_s0] ss:$0 sm:$0xff] }
   0x2   :  { %5 = vst [vmem:[%s29_s1] sm:$0xff] %v4_v0  ;;  %8 = vst [vmem:[%s29_s1 + $0x8] sm:$0xff] %v4_v0 }

// kernel: generator_forward.8
= control target key start
LH: loop header
LB: loop body
LE: loop exit
PB: predicated region body
PF: predicated region fallthrough
CT: control target
= control target key end

     0   :  { %v20_v0 = vlaneseq  ;;  %s176_s1 = inlined_call_operand.vmem [shape: f32[1,512], index: 1, kind: input, shape index: {}]   ;;  %s177_s2 = inlined_call_operand.vmem [shape: f32[1,512], index: 2, kind: input, shape index: {}]   ;;  %s178_s0 = inlined_call_operand.vmem [shape: f32[8,512], index: 0, kind: input, shape index: {}]   ;;  %s179_s3 = inlined_call_operand.vmem [shape: bf16[8,512], index: 3, kind: output, shape index: {}]  }
   0x1   :  { %v18_v2 = vld [vmem:[%s176_s1] sm:$0xf]  ;;  %v15_v9 = vld [vmem:[%s178_s0 + $0x8] sm:$0xff]  ;;  %v16_v14 = vld [vmem:[%s178_s0 + $0x10] sm:$0xff] }
   0x2   :  { %v21_v1 = vshrl.u32 %v20_v0, 7  ;;  %v44_v3 = vld [vmem:[%s177_s2] sm:$0xf]  ;;  %v17_v15 = vld [vmem:[%s178_s0 + $0x18] sm:$0xff] }
   0x3   :  { %v14_v8 = vld [vmem:[%s178_s0] sm:$0xff] }
   0x4   :  { %v22_v4 = vsub.s32 0, %v21_v1  ;;  %v26_v5 = vsub.s32 1, %v21_v1  ;;  %v30_v6 = vsub.s32 2, %v21_v1  ;;  %v34_v7 = vsub.s32 3, %v21_v1 }
   0x6   :  { %v23_v10 = vrot.slane %v18_v2, %v22_v4  ;;  %v27_v11 = vrot.slane %v18_v2, %v26_v5  ;;  %v49_v12 = vrot.slane %v44_v3, %v22_v4  ;;  %v53_v13 = vrot.slane %v44_v3, %v26_v5 }
   0x7   :  { %v31_v16 = vrot.slane %v18_v2, %v30_v6  ;;  %v35_v17 = vrot.slane %v18_v2, %v34_v7  ;;  %v57_v18 = vrot.slane %v44_v3, %v30_v6  ;;  %v61_v19 = vrot.slane %v44_v3, %v34_v7 }
   0x8   :  { %v40_v20 = vmul.f32 %v23_v10, %v14_v8  ;;  %v41_v21 = vmul.f32 %v27_v11, %v15_v9 }
   0x9   :  { %v42_v22 = vmul.f32 %v31_v16, %v16_v14  ;;  %v43_v23 = vmul.f32 %v35_v17, %v17_v15 }
   0xa   :  { %v66_v24 = vadd.f32 %v49_v12, %v40_v20  ;;  %v67_v25 = vadd.f32 %v53_v13, %v41_v21 }
   0xb   :  { %v68_v26 = vadd.f32 %v57_v18, %v42_v22  ;;  %v69_v27 = vadd.f32 %v61_v19, %v43_v23 }
   0xc   :  { %v74_v28 = vmin.f32 %v66_v24, 0.0  ;;  %v75_v29 = vmin.f32 %v67_v25, 0.0  ;;  %vm70_vm0 = vcmp.gt.f32.partialorder %v66_v24, 0.0  ;;  %vm71_vm1 = vcmp.gt.f32.partialorder %v67_v25, 0.0 }
   0xd   :  { %v76_v30 = vmin.f32 %v68_v26, 0.0  ;;  %v77_v31 = vmin.f32 %v69_v27, 0.0  ;;  %vm72_vm2 = vcmp.gt.f32.partialorder %v68_v26, 0.0  ;;  %vm73_vm3 = vcmp.gt.f32.partialorder %v69_v27, 0.0 }
   0xe   :  { %v78_v32 = vmul.f32 1.442695, %v74_v28  ;;  %v80_v33 = vmul.f32 1.442695, %v75_v29 }
   0xf   :  { %v82_v34 = vmul.f32 1.442695, %v76_v30  ;;  %v84_v35 = vmul.f32 1.442695, %v77_v31 }
  0x10   :  { %124 = vpow2.f32 %v78_v32 }
  0x11   :  { %126 = vpow2.f32 %v80_v33 }
  0x12   :  { %128 = vpow2.f32 %v82_v34 }
  0x13   :  { %130 = vpow2.f32 %v84_v35 }
  0x1d   :  { %v125_v36 = vpop.eup %124 }
  0x1e   :  { %v127_v37 = vpop.eup %126  ;;  %v116_v38 = vadd.f32 -1.0, %v125_v36 }
  0x1f   :  { %v129_v39 = vpop.eup %128  ;;  %v117_v40 = vadd.f32 -1.0, %v127_v37 }
  0x20   :  { %v131_v41 = vpop.eup %130  ;;  %v90_v42 = vsel %vm70_vm0, %v66_v24, %v116_v38  ;;  %v118_v43 = vadd.f32 -1.0, %v129_v39 }
  0x21   :  { %v91_v44 = vsel %vm71_vm1, %v67_v25, %v117_v40  ;;  %v119_v45 = vadd.f32 -1.0, %v131_v41 }
  0x22   :  { %v122_v46 = vpack.c.bf16 %v91_v44, %v90_v42  ;;  %v92_v47 = vsel %vm72_vm2, %v68_v26, %v118_v43 }
  0x23   :  { %v93_v48 = vsel %vm73_vm3, %v69_v27, %v119_v45 }
  0x24   :  { %110 = vst [vmem:[%s179_s3] sm:$0xff] %v122_v46  ;;  %v123_v49 = vpack.c.bf16 %v93_v48, %v92_v47 }
  0x26   :  { %111 = vst [vmem:[%s179_s3 + $0x8] sm:$0xff] %v123_v49 }

// kernel: tile.47
= control target key start
LH: loop header
LB: loop body
LE: loop exit
PB: predicated region body
PF: predicated region fallthrough
CT: control target
= control target key end

     0   :  { %s22_s0 = inlined_call_operand.vmem [shape: f32[16], index: 0, kind: input, shape index: {}]   ;;  %s23_s1 = inlined_call_operand.vmem [shape: f32[4,16], index: 1, kind: output, shape index: {}]  }
   0x1   :  { %v4_v0 = vld [vmem:[%s22_s0] ss:$0 sm:$0xff] }
   0x2   :  { %5 = vst [vmem:[%s23_s1] sm:$0xf] %v4_v0 }

// kernel: tile.49
= control target key start
LH: loop header
LB: loop body
LE: loop exit
PB: predicated region body
PF: predicated region fallthrough
CT: control target
= control target key end

     0   :  { %vm8_vm0 = vcmask 130048   ;;  %s40_s8 = smov 16   ;;  %s41_s9 = smov 32   ;;  %vm14_vm1 = vcmask 523648   ;;  %vm20_vm2 = vcmask 392448   ;;  %vm26_vm3 = vcmask 261248   ;;  %s58_s0 = inlined_call_operand.vmem [shape: f32[4,16], index: 0, kind: input, shape index: {}]   ;;  %s59_s1 = inlined_call_operand.vmem [shape: f32[1,64], index: 1, kind: output, shape index: {}]  }
   0x1   :  { %v5_v0 = vld [vmem:[%s58_s0] sm:$0xf]  ;;  %s39_s0 = smov 48  }
   0x2   :  { %6 = vst [vmem:[#allocation1] sm:$0xf] %v5_v0 }
   0x9   :  { %v11_v1 = vld [vmem:[#allocation1 + $0x3] sm:$0x1]   ;;  %v23_v2 = vld [vmem:[#allocation1 + $0x1] sm:$0x1]   ;;  %v7_v3 = vld [vmem:[#allocation1] sm:$0x1]  }
   0xa   :  { %12 = vrot.lane.b32.xlu0 %v11_v1, %s39_s0  ;;  %24 = vrot.lane.b32.xlu1 %v23_v2, %s40_s8  ;;  %v17_v4 = vld [vmem:[#allocation1 + $0x2] sm:$0x1]   ;;  %9 = vst.msk [vmem:[#allocation0] sm:$0x1] %vm8_vm0, %v7_v3  }
   0xe   :  { %18 = vrot.lane.b32.xlu0 %v17_v4, %s41_s9 }
  0x7c   :  { %v13_v5 = vpop.permute.xlu0 %12   ;;  %v25_v6 = vpop.permute.xlu1 %24  }
  0x7d   :  { %15 = vst.msk [vmem:[#allocation0] sm:$0x1] %vm14_vm1, %v13_v5  }
  0x80   :  { %v19_v7 = vpop.permute.xlu0 %18  }
  0x81   :  { %21 = vst.msk [vmem:[#allocation0] sm:$0x1] %vm20_vm2, %v19_v7  }
  0x82   :  { %27 = vst.msk [vmem:[#allocation0] sm:$0x1] %vm26_vm3, %v25_v6  }
  0x89   :  { %v32_v8 = vld [vmem:[#allocation0] sm:$0x1] }
  0x8a   :  { %35 = vst [vmem:[%s59_s1] sm:$0x1] %v32_v8 }

// kernel: generator_forward.7
= control target key start
LH: loop header
LB: loop body
LE: loop exit
PB: predicated region body
PF: predicated region fallthrough
CT: control target
= control target key end

     0   :  { %7 = vsyncpa [#allocation3], 0  ;;  %s674_s0 = inlined_call_operand.vmem [shape: bf16[8,128], index: 0, kind: input, shape index: {}]   ;;  %s675_s1 = inlined_call_operand.hbm [shape: bf16[128,512], index: 1, kind: input, shape index: {}]   ;;  %s676_s2 = inlined_call_operand.vmem [shape: f32[8,512], index: 2, kind: output, shape index: {}]  }
   0x1   :  { %9 = vsyncpa [#allocation3 + $0x1], 0  ;;  %s555_s9 = smov 0   ;;  %s557_s10 = smov 0  }
   0x2   :  { %s559_s11 = smov 0   ;;  %s561_s12 = smov 0  }
   0x3 LB: > { %s374_s13 = sadd.s32 4294967295, %s533_s12   ;;  %s575_s14 = sadd.s32 1, %s533_s12   ;;  %s533_s12 = sphi %s561_s12, %s684_s12   ;;  %s529_s11 = sphi %s559_s11, %s683_s11   ;;  %s525_s10 = sphi %s557_s10, %s682_s10   ;;  %s521_s9 = sphi %s555_s9, %s681_s9  }
   0x4   : > { %s40_s15 = ssub.s32 %s533_s12, %s575_s14  ;;  %s43_s16 = sadd.s32 1, %s529_s11 }
   0x5   : > { %p41_p0 = scmp.eq.s32.totalorder %s40_s15, 0  ;;  %p50_p1 = scmp.ne.s32.totalorder %s529_s11, %s525_s10 }
   0x6   : > { %p51_p2 = scmp.eq.s32.totalorder %s533_s12, 0  ;;  %p56_p3 = scmp.ne.s32.totalorder %s525_s10, %s521_s9 }
   0x7   : > { %s585_s17 = scalar_select %p41_p0, %s529_s11, %s43_s16  }
   0x8   : > { %p52_p4 = por %p51_p2, %p50_p1  ;;  %p57_p5 = scmp.eq.s32.totalorder %s374_s13, 0 }
   0x9   : > { %p410_p6 = scmp.lt.s32.totalorder %s533_s12, 2  ;;  %s109_s19 = sand.u32 1, %s529_s11  }
   0xa   : > { %p590_p7 = por %p57_p5, %p56_p3  ;;  %s378_s20 = sshll.u32 %s109_s19, 7 }
   0xb   : > { %s403_s21 = sshll.u32 %s533_s12, 7  ;;  %s113_s25 = scalar_lea.vmem [#allocation2], %s378_s20 }
   0xc   : > { %s678_s18 = scalar_select %p590_p7, 1, 0 }
   0xd   : > { %s599_s24 = scalar_lea.hbm %s675_s1, %s403_s21  ;;  %s120_s26 = sshll.u32 %s113_s25, 4  ;;  %s601_s26 = int_to_ptr.vmem [resolvable:$true] %s120_s26 }
   0xe   : > { %p603_p8 = pnand %p410_p6, %p52_p4  ;;  %s607_s28 = scalar_lea.sflag [#allocation3], %s109_s19 }
   0xf   : > { %s471_s29 = scalar_lea.hbm %s599_s24, 2048  ;;  %s476_s4 = scalar_lea.hbm %s675_s1, 4096 }
  0x10   : > { %p472_p9 = scmp.ne.s32.totalorder %s599_s24, %s471_s29  ;;  %p473_p10 = pneg %p603_p8 }
  0x11   : > { %p477_p13 = scmp.lt.s32.totalorder %s599_s24, %s675_s1  ;;  %p478_p0 = scmp.lt.s32.totalorder %s476_s4, %s471_s29 }
  0x12   : > { %p474_p11 = pnand %p473_p10, %p472_p9 }
  0x13   : > { %p479_p1 = por %p478_p0, %p477_p13 }
  0x14   : > { %p475_p12 = pneg %p474_p11 }
  0x16   : > { %p480_p2 = pnand %p479_p1, %p475_p12 }
  0x18   : > { %483 = shalt.err (!%p480_p2)
}
  0x19   : > { %s484_s7 = scalar_lea.vmem %s601_s26, 2048  ;;  %s535_s8 = smov [#allocation2]  }
  0x1a   : > { %p485_p3 = scmp.ne.s32.totalorder %s601_s26, %s484_s7  ;;  %s489_s9 = sshll.u32 %s535_s8, 4  ;;  %s490_s9 = int_to_ptr.vmem [resolvable:$false] %s489_s9 }
  0x1b   : > { %s491_s15 = scalar_lea.vmem %s490_s9, 4096  ;;  %p492_p6 = scmp.lt.s32.totalorder %s601_s26, %s490_s9 }
  0x1c   : > { %p487_p4 = pnand %p485_p3, %p473_p10  ;;  %p493_p9 = scmp.lt.s32.totalorder %s491_s15, %s484_s7 }
  0x1e   : > { %p488_p5 = pneg %p487_p4  ;;  %p494_p11 = por %p493_p9, %p492_p6 }
  0x20   : > { %p495_p7 = pnand %p494_p11, %p488_p5 }
  0x22   : > { %498 = shalt.err (!%p495_p7)
}
  0x23   : > { %s536_s16 = smov 256   ;;  %s537_s19 = smov 128  }
  0x24   : > { %s538_s20 = smov 8   ;;  %p381_p10 = scmp.ge.s32.totalorder %s533_s12, 1 }
  0x25   : > { %409 = dma.hbm_to_vmem [thread:$0]  (!%p603_p8), %s599_s24, 2048, %s601_s26, %s607_s28, %s536_s16, %s537_s19, %s538_s20  }
  0x26   : > { %p128_p12 = scmp.lt.s32.totalorder %s533_s12, 3 }
  0x28   : > { %p129_p13 = pnand %p381_p10, %p128_p12 }
  0x29   : > { %s134_s21 = sand.u32 (!%p129_p13), 1, %s525_s10   ;;  %p680_p7 = scmp.ne.s32.totalorder (!%p129_p13), %s678_s18, 0 }
  0x2a   : > { %132 = sbr.rel (%p129_p13) target bundleno = 280 (0x118), region = 28  ;;  %s382_s22 = sshll.u32 (!%p129_p13), %s134_s21, 7 }
  0x2b   : > { %s135_s23 = scalar_lea.sflag (!%p129_p13), [#allocation3], %s134_s21  ;;  %s631_s25 = scalar_lea.vmem (!%p129_p13), [#allocation2], %s382_s22 }
  0x2f   : > { %516 = dma.done.wait (%p680_p7), %s135_s23, 2048  }
  0x30   : > { %518 = vsyncadd (%p680_p7), %s135_s23, 4294965248  ;;  %v539_v0 = vmov 0   ;;  %v447_v1 = vld [vmem:[%s631_s25 + $0x74] ss:$8 sps:$4 sm:$0xff]   ;;  %v449_v2 = vld [vmem:[%s631_s25 + $0x70] ss:$8 sps:$4 sm:$0xff]  }
  0x31   : > { %296 = vmatprep.mubr.bf16.mxu0 %v539_v0  ;;  %264 = vmatprep.subr.bf16.mxu0 %v447_v1  ;;  %v450_v3 = vld [vmem:[%s631_s25 + $0x64] ss:$8 sps:$4 sm:$0xff]   ;;  %v452_v4 = vld [vmem:[%s631_s25 + $0x60] ss:$8 sps:$4 sm:$0xff]   ;;  %v453_v5 = vld [vmem:[%s631_s25 + $0x54] ss:$8 sps:$4 sm:$0xff]  }
  0x32   : > { %265 = vmatpush1.bf16.msra.mxu0 %v449_v2  ;;  %v455_v6 = vld [vmem:[%s631_s25 + $0x50] ss:$8 sps:$4 sm:$0xff]   ;;  %v456_v7 = vld [vmem:[%s631_s25 + $0x44] ss:$8 sps:$4 sm:$0xff]   ;;  %v458_v8 = vld [vmem:[%s631_s25 + $0x40] ss:$8 sps:$4 sm:$0xff]  }
  0x33   : > { %266 = vmatprep.subr.bf16.mxu0 %v450_v3  ;;  %v459_v9 = vld [vmem:[%s631_s25 + $0x34] ss:$8 sps:$4 sm:$0xff]   ;;  %v461_v10 = vld [vmem:[%s631_s25 + $0x30] ss:$8 sps:$4 sm:$0xff]   ;;  %v462_v11 = vld [vmem:[%s631_s25 + $0x24] ss:$8 sps:$4 sm:$0xff]  }
  0x34   : > { %v464_v12 = vld [vmem:[%s631_s25 + $0x20] ss:$8 sps:$4 sm:$0xff]   ;;  %v465_v13 = vld [vmem:[%s631_s25 + $0x14] ss:$8 sps:$4 sm:$0xff]   ;;  %v467_v14 = vld [vmem:[%s631_s25 + $0x10] ss:$8 sps:$4 sm:$0xff]  }
  0x35   : > { %v468_v15 = vld [vmem:[%s631_s25 + $0x4] ss:$8 sps:$4 sm:$0xff]   ;;  %v470_v16 = vld [vmem:[%s631_s25] ss:$8 sps:$4 sm:$0xff]   ;;  %s383_s26 = sshll.u32 %s374_s13, 1 }
  0x36   : > { %267 = vmatpush1.bf16.msra.mxu0 %v452_v4  ;;  %v167_v17 = vld [vmem:[%s674_s0] sm:$0xf]  ;;  %p161_p8 = scmp.lt.s32.totalorder %s383_s26, 3 }
  0x37   : > { %268 = vmatprep.subr.bf16.mxu0 %v453_v5 }
  0x38   : > { %s686_s26 = smov (!%p161_p8, %s383_s26), 3 }
  0x39   : > { %s384_s27 = sshll.u32 %s686_s26, 3 }
  0x3a   : > { %269 = vmatpush1.bf16.msra.mxu0 %v455_v6  ;;  %s164_s30 = scalar_lea.vmem %s676_s2, %s384_s27 }
  0x3b   : > { %270 = vmatprep.subr.bf16.mxu0 %v456_v7 }
  0x3e   : > { %271 = vmatpush1.bf16.msra.mxu0 %v458_v8 }
  0x3f   : > { %272 = vmatprep.subr.bf16.mxu0 %v459_v9 }
  0x42   : > { %273 = vmatpush1.bf16.msra.mxu0 %v461_v10 }
  0x43   : > { %274 = vmatprep.subr.bf16.mxu0 %v462_v11 }
  0x46   : > { %275 = vmatpush1.bf16.msra.mxu0 %v464_v12 }
  0x47   : > { %276 = vmatprep.subr.bf16.mxu0 %v465_v13 }
  0x4a   : > { %277 = vmatpush1.bf16.msra.mxu0 %v467_v14 }
  0x4b   : > { %278 = vmatprep.subr.bf16.mxu0 %v468_v15 }
  0x4e   : > { %279 = vmatpush1.bf16.msra.mxu0 %v470_v16 }
  0x51   : > { %297 = vmatmul.mubr.bf16.vlgmr.msra.gmra.mxu0 %v167_v17 }
 0x111   : > { %v298_v18 = vpop.f32.mrf.mxu0 }
 0x112   : > { %305 = vst [vmem:[%s164_s30] sm:$0xff] %v298_v18 }
 0x113   : > { %v300_v19 = vpop.f32.mrf.mxu0 }
 0x114   : > { %306 = vst [vmem:[%s164_s30 + $0x8] sm:$0xff] %v300_v19 }
 0x115   : > { %v302_v20 = vpop.f32.mrf.mxu0 }
 0x117   : > { %v303_v21 = vpop.f32.mrf.mxu0 }
 0x118 PF: > { %p12_p0 = scmp.ge.s32.totalorder %s575_s14, 4   ;;  %s681_s9 = smov %s525_s10 }
 0x119   : > { %s682_s10 = smov %s529_s11  ;;  %s683_s11 = smov %s585_s17 }
 0x11a   : > { %s684_s12 = smov %s575_s14  ;;  %14 = sbr.rel (!%p12_p0) target bundleno = 3 (0x3), region = 68 }
 0x11f   :  { %329 = vsyncpa [#allocation3], 1 }
 0x120   :  { %331 = vsyncpa [#allocation3 + $0x1], 1 }

// kernel: generator_forward.10
= control target key start
LH: loop header
LB: loop body
LE: loop exit
PB: predicated region body
PF: predicated region fallthrough
CT: control target
= control target key end

     0   :  { %vm84_vm3 = vcmask 519168   ;;  %s168_s0 = inlined_call_operand.vmem [shape: bf16[32,64], index: 0, kind: input, shape index: {}]   ;;  %s169_s1 = inlined_call_operand.vmem [shape: f32[1,64], index: 1, kind: input, shape index: {}]   ;;  %s170_s2 = inlined_call_operand.vmem [shape: f32[1,64], index: 2, kind: input, shape index: {}]   ;;  %s171_s3 = inlined_call_operand.vmem [shape: bf16[32,64], index: 3, kind: output, shape index: {}]  }
   0x1   :  { %v108_v0 = vld [vmem:[%s168_s0] sm:$0xff]   ;;  %v115_v4 = vld [vmem:[%s168_s0 + $0x8] sm:$0xff]  }
   0x2   :  { %v93_v1 = vld [vmem:[%s169_s1] ss:$0 sm:$0xff]  ;;  %v109_v2 = vunpack.c.l.bf16 %v108_v0  ;;  %v110_v3 = vunpack.c.h.bf16 %v108_v0  ;;  %v113_v6 = vunpack.c.l.bf16 %v115_v4  ;;  %v114_v7 = vunpack.c.h.bf16 %v115_v4 }
   0x3   :  { %v94_v5 = vld [vmem:[%s170_s2] ss:$0 sm:$0xff] }
   0x4   :  { %v29_v8 = vmul.f32 %v109_v2, %v93_v1  ;;  %v30_v9 = vmul.f32 %v110_v3, %v93_v1  ;;  %v31_v10 = vmul.f32 %v113_v6, %v93_v1  ;;  %v32_v11 = vmul.f32 %v114_v7, %v93_v1 }
   0x6   :  { %v40_v12 = vadd.f32 %v94_v5, %v29_v8  ;;  %v41_v13 = vadd.f32 %v94_v5, %v30_v9  ;;  %v42_v14 = vadd.f32 %v94_v5, %v31_v10  ;;  %v43_v15 = vadd.f32 %v94_v5, %v32_v11 }
   0x8   :  { %v48_v16 = vmin.f32 %v40_v12, 0.0  ;;  %v49_v17 = vmin.f32 %v41_v13, 0.0  ;;  %v50_v18 = vmin.f32 %v42_v14, 0.0  ;;  %v51_v19 = vmin.f32 %v43_v15, 0.0 }
   0x9   :  { %vm44_vm0 = vcmp.gt.f32.partialorder %v40_v12, 0.0  ;;  %vm45_vm1 = vcmp.gt.f32.partialorder %v41_v13, 0.0  ;;  %vm46_vm2 = vcmp.gt.f32.partialorder %v42_v14, 0.0  ;;  %vm47_vm4 = vcmp.gt.f32.partialorder %v43_v15, 0.0 }
   0xa   :  { %v52_v20 = vmul.f32 1.442695, %v48_v16  ;;  %v54_v21 = vmul.f32 1.442695, %v49_v17  ;;  %v56_v22 = vmul.f32 1.442695, %v50_v18 }
   0xb   :  { %v58_v23 = vmul.f32 1.442695, %v51_v19 }
   0xc   :  { %116 = vpow2.f32 %v52_v20 }
   0xd   :  { %118 = vpow2.f32 %v54_v21 }
   0xe   :  { %120 = vpow2.f32 %v56_v22 }
   0xf   :  { %122 = vpow2.f32 %v58_v23 }
  0x19   :  { %v117_v24 = vpop.eup %116 }
  0x1a   :  { %v119_v25 = vpop.eup %118  ;;  %v95_v26 = vadd.f32 -1.0, %v117_v24 }
  0x1b   :  { %v121_v27 = vpop.eup %120  ;;  %v96_v28 = vadd.f32 -1.0, %v119_v25 }
  0x1c   :  { %v123_v29 = vpop.eup %122  ;;  %v64_v30 = vsel %vm44_vm0, %v40_v12, %v95_v26  ;;  %v97_v31 = vadd.f32 -1.0, %v121_v27 }
  0x1d   :  { %v103_v32 = vpack.c.bf16 %v64_v30, %v64_v30  ;;  %v65_v33 = vsel %vm45_vm1, %v41_v13, %v96_v28  ;;  %v98_v34 = vadd.f32 -1.0, %v123_v29 }
  0x1e   :  { %v104_v35 = vpack.c.bf16 %v65_v33, %v65_v33  ;;  %v66_v36 = vsel %vm46_vm2, %v42_v14, %v97_v31 }
  0x1f   :  { %85 = vst.msk [vmem:[%s171_s3] sm:$0xf] %vm84_vm3, %v103_v32  ;;  %v105_v37 = vpack.c.bf16 %v66_v36, %v66_v36  ;;  %v67_v38 = vsel %vm47_vm4, %v43_v15, %v98_v34 }
  0x20   :  { %86 = vst.msk [vmem:[%s171_s3 + $0x4] sm:$0xf] %vm84_vm3, %v104_v35  ;;  %v106_v39 = vpack.c.bf16 %v67_v38, %v67_v38 }
  0x21   :  { %87 = vst.msk [vmem:[%s171_s3 + $0x8] sm:$0xf] %vm84_vm3, %v105_v37 }
  0x22   :  { %88 = vst.msk [vmem:[%s171_s3 + $0xc] sm:$0xf] %vm84_vm3, %v106_v39 }

// kernel: generator_forward.9
= control target key start
LH: loop header
LB: loop body
LE: loop exit
PB: predicated region body
PF: predicated region fallthrough
CT: control target
= control target key end

     0   :  { %s955_s12 = smov 0   ;;  %s1100_s0 = inlined_call_operand.vmem [shape: bf16[2,24,96], index: 0, kind: input, shape index: {}]   ;;  %s1101_s1 = inlined_call_operand.vmem [shape: bf16[2,2,96,32], index: 1, kind: input, shape index: {}]   ;;  %s1102_s2 = inlined_call_operand.vmem [shape: bf16[2,16,64], index: 2, kind: output, shape index: {0}]   ;;  %s1103_s3 = inlined_call_operand.vmem [shape: f32[2,2,64], index: 3, kind: output, shape index: {1}]  }
   0x1 LB: > { %s708_s13 = sadd.s32 4294967295, %s930_s12   ;;  %p712_p0 = scmp.ge.s32.totalorder %s930_s12, 1  ;;  %s930_s12 = sphi %s955_s12, %s14_s12  }
   0x2   : > { %p140_p1 = scmp.lt.s32.totalorder %s930_s12, 3 }
   0x4   : > { %p141_p2 = pnand %p712_p0, %p140_p1 }
   0x5   : > { %p168_p3 = scmp.lt.s32.totalorder (!%p141_p2), %s708_s13, 1 }
   0x6   : > { %144 = sbr.rel (%p141_p2) target bundleno = 395 (0x18b), region = 28 }
   0xb   : > { %v896_v0 = vld [vmem:[%s1101_s1 + $0x58] sm:$0xff]   ;;  %v932_v1 = vmov 0.0   ;;  %v897_v2 = vld [vmem:[%s1101_s1 + $0x28] sm:$0xff]   ;;  %v898_v3 = vld [vmem:[%s1101_s1 + $0x50] sm:$0xff]   ;;  %vm933_vm0 = vmmov 0   ;;  %s1105_s13 = smov (!%p168_p3, %s708_s13), 1 }
   0xc   : > { %820 = vmatprep.subr.bf16.mxu0 %v932_v1  ;;  %836 = vmatprep.subr.bf16.mxu1 %v932_v1  ;;  %v899_v4 = vld [vmem:[%s1101_s1 + $0x20] sm:$0xff]   ;;  %v900_v5 = vld [vmem:[%s1101_s1 + $0x48] sm:$0xff]   ;;  %s884_s24 = smul.u32 12, %s1105_s13  ;;  %v901_v6 = vld [vmem:[%s1101_s1 + $0x18] sm:$0xff]   ;;  %vm304_vm1 = vcmask 1045504   ;;  %vm253_vm2 = vcmask 785408  }
   0xd   : > { %821 = vmatpush3.bf16.msra.mxu0 %v896_v0  ;;  %832 = vmatprep.mubr.msk.bf16.mxu0 %vm933_vm0, %v932_v1  ;;  %v902_v7 = vld [vmem:[%s1101_s1 + $0x40] sm:$0xff]   ;;  %v903_v8 = vld [vmem:[%s1101_s1 + $0x10] sm:$0xff]   ;;  %v904_v11 = vld [vmem:[%s1101_s1 + $0x38] sm:$0xff]   ;;  %s789_s17 = sshll.u32 %s1105_s13, 3  ;;  %vm583_vm3 = vcmask 261120   ;;  %vm594_vm4 = vcmask 519168  }
   0xe   : > { %837 = vmatpush3.bf16.msra.mxu1 %v897_v2  ;;  %822 = vmatprep.subr.bf16.mxu0 %v932_v1  ;;  %s997_s29 = scalar_lea.vmem %s1100_s0, %s884_s24  ;;  %v905_v12 = vld [vmem:[%s1101_s1 + $0x8] sm:$0xff]   ;;  %v906_v15 = vld [vmem:[%s1101_s1 + $0x30] sm:$0xff]   ;;  %v907_v16 = vld [vmem:[%s1101_s1] sm:$0xff]   ;;  %s177_s20 = scalar_lea.vmem %s1102_s2, %s789_s17  ;;  %vm597_vm5 = vcmask 523264   ;;  %vm618_vm6 = vcmask 1040384   ;;  %vm620_vm7 = vcmask 517120  }
   0xf   : > { %838 = vmatprep.subr.bf16.mxu1 %v932_v1  ;;  %848 = vmatprep.mubr.msk.bf16.mxu1 %vm933_vm0, %v932_v1  ;;  %v1008_v9 = vld [vmem:[%s997_s29 + $0x4] sm:$0xf]  ;;  %v183_v10 = vld [vmem:[%s997_s29] sm:$0xc]  ;;  %v911_v21 = vld [vmem:[%s1101_s1 + $0xb8] sm:$0xff]   ;;  %s716_s21 = sshll.u32 %s1105_s13, 1 }
  0x10   : > { %v737_v13 = vcombine.low %v183_v10, %v1008_v9  ;;  %v910_v14 = vld [vmem:[%s997_s29 + $0x8] ss:$0 sps:$4 sm:$0x33]   ;;  %v198_v17 = vld [vmem:[%s997_s29] sm:$0xf]  ;;  %v913_v24 = vld [vmem:[%s1101_s1 + $0xb0] sm:$0xff]   ;;  %s181_s24 = scalar_lea.vmem %s1103_s3, %s716_s21 }
  0x11   : > { %823 = vmatpush3.bf16.msra.mxu0 %v898_v3  ;;  %v306_v19 = vrot.slane %v910_v14, 2  ;;  %v729_v20 = vcombine.low %v198_v17, %v1008_v9  ;;  %v912_v23 = vld [vmem:[%s1101_s1 + $0x88] sm:$0xff]   ;;  %v914_v25 = vld [vmem:[%s1101_s1 + $0x80] sm:$0xff]   ;;  %v916_v27 = vld [vmem:[%s1101_s1 + $0x78] sm:$0xff]  }
  0x12   : > { %839 = vmatpush3.bf16.msra.mxu1 %v899_v4  ;;  %824 = vmatprep.subr.bf16.mxu0 %v932_v1  ;;  %v305_v18 = vrot.slane %v737_v13, 2  ;;  %v915_v26 = vld [vmem:[%s1101_s1 + $0xa8] sm:$0xff]   ;;  %v917_v28 = vld [vmem:[%s1101_s1 + $0xa0] sm:$0xff]   ;;  %v918_v29 = vld [vmem:[%s1101_s1 + $0x70] sm:$0xff]  }
  0x13   : > { %840 = vmatprep.subr.bf16.mxu1 %v932_v1  ;;  %v919_v30 = vld [vmem:[%s1101_s1 + $0x98] sm:$0xff]   ;;  %v920_v31 = vld [vmem:[%s1101_s1 + $0x68] sm:$0xff]   ;;  %v921_v32 = vld [vmem:[%s1101_s1 + $0x90] sm:$0xff]  }
  0x14   : > { %v307_v22 = vsel %vm304_vm1, %v305_v18, %v306_v19  ;;  %v922_v33 = vld [vmem:[%s1101_s1 + $0x60] sm:$0xff]   ;;  %v388_v34 = vld [vmem:[%s997_s29 + $0x8] sm:$0xf]  ;;  %s934_s29 = smov 32  }
  0x15   : > { %825 = vmatpush3.bf16.msra.mxu0 %v900_v5  ;;  %v777_v35 = vcombine.low %v1008_v9, %v388_v34 }
  0x16   : > { %841 = vmatpush3.bf16.msra.mxu1 %v901_v6  ;;  %826 = vmatprep.subr.bf16.mxu0 %v932_v1 }
  0x17   : > { %842 = vmatprep.subr.bf16.mxu1 %v932_v1 }
  0x19   : > { %827 = vmatpush3.bf16.msra.mxu0 %v902_v7 }
  0x1a   : > { %843 = vmatpush3.bf16.msra.mxu1 %v903_v8  ;;  %828 = vmatprep.subr.bf16.mxu0 %v932_v1 }
  0x1b   : > { %844 = vmatprep.subr.bf16.mxu1 %v932_v1 }
  0x1d   : > { %829 = vmatpush3.bf16.msra.mxu0 %v904_v11 }
  0x1e   : > { %845 = vmatpush3.bf16.msra.mxu1 %v905_v12  ;;  %830 = vmatprep.subr.bf16.mxu0 %v932_v1 }
  0x1f   : > { %846 = vmatprep.subr.bf16.mxu1 %v932_v1 }
  0x21   : > { %831 = vmatpush3.bf16.msra.mxu0 %v906_v15 }
  0x22   : > { %847 = vmatpush3.bf16.msra.mxu1 %v907_v16  ;;  %852 = vmatprep.subr.bf16.mxu0 %v932_v1 }
  0x23   : > { %868 = vmatprep.subr.bf16.mxu1 %v932_v1 }
  0x24   : > { %833 = vmatmul.mubr.msk.bf16.vlgmr.msra.gmra.mxu0 %vm253_vm2, %v729_v20 }
  0x25   : > { %849 = vmatmul.mubr.msk.bf16.vlgmr.msra.gmra.mxu1 %vm253_vm2, %v307_v22  ;;  %853 = vmatpush3.bf16.msra.mxu0 %v911_v21 }
  0x26   : > { %869 = vmatpush3.bf16.msra.mxu1 %v912_v23  ;;  %854 = vmatprep.subr.bf16.mxu0 %v932_v1 }
  0x27   : > { %870 = vmatprep.subr.bf16.mxu1 %v932_v1  ;;  %864 = vmatprep.mubr.msk.bf16.mxu0 %vm933_vm0, %v932_v1 }
  0x28   : > { %880 = vmatprep.mubr.msk.bf16.mxu1 %vm933_vm0, %v932_v1 }
  0x29   : > { %855 = vmatpush3.bf16.msra.mxu0 %v913_v24 }
  0x2a   : > { %871 = vmatpush3.bf16.msra.mxu1 %v914_v25  ;;  %856 = vmatprep.subr.bf16.mxu0 %v932_v1 }
  0x2b   : > { %872 = vmatprep.subr.bf16.mxu1 %v932_v1 }
  0x2d   : > { %857 = vmatpush3.bf16.msra.mxu0 %v915_v26 }
  0x2e   : > { %873 = vmatpush3.bf16.msra.mxu1 %v916_v27  ;;  %858 = vmatprep.subr.bf16.mxu0 %v932_v1 }
  0x2f   : > { %874 = vmatprep.subr.bf16.mxu1 %v932_v1 }
  0x31   : > { %859 = vmatpush3.bf16.msra.mxu0 %v917_v28 }
  0x32   : > { %875 = vmatpush3.bf16.msra.mxu1 %v918_v29  ;;  %860 = vmatprep.subr.bf16.mxu0 %v932_v1 }
  0x33   : > { %876 = vmatprep.subr.bf16.mxu1 %v932_v1 }
  0x35   : > { %861 = vmatpush3.bf16.msra.mxu0 %v919_v30 }
  0x36   : > { %877 = vmatpush3.bf16.msra.mxu1 %v920_v31  ;;  %862 = vmatprep.subr.bf16.mxu0 %v932_v1 }
  0x37   : > { %878 = vmatprep.subr.bf16.mxu1 %v932_v1 }
  0x39   : > { %863 = vmatpush3.bf16.msra.mxu0 %v921_v32 }
  0x3a   : > { %879 = vmatpush3.bf16.msra.mxu1 %v922_v33 }
  0x3c   : > { %865 = vmatmul.mubr.msk.bf16.vlgmr.msra.gmra.mxu0 %vm253_vm2, %v307_v22 }
  0x3d   : > { %881 = vmatmul.mubr.msk.bf16.vlgmr.msra.gmra.mxu1 %vm253_vm2, %v777_v35 }
  0xe4   : > { %v291_v36 = vpop.f32.mrf.mxu0 }
  0xe5   : > { %v381_v37 = vpop.f32.mrf.mxu1 }
  0xe6   : > { %v382_v38 = vadd.f32 %v381_v37, %v291_v36  ;;  %v834_v39 = vpop.f32.mrf.mxu0 }
  0xe7   : > { %v850_v40 = vpop.f32.mrf.mxu1 }
  0xe8   : > { %v294_v41 = vpop.f32.mrf.mxu0 }
  0xe9   : > { %v384_v42 = vpop.f32.mrf.mxu1 }
  0xea   : > { %v385_v43 = vadd.f32 %v384_v42, %v294_v41  ;;  %v835_v44 = vpop.f32.mrf.mxu0 }
  0xeb   : > { %v851_v45 = vpop.f32.mrf.mxu1 }
  0xfc   : > { %v485_v46 = vpop.f32.mrf.mxu0 }
  0xfd   : > { %v568_v47 = vpop.f32.mrf.mxu1 }
  0xfe   : > { %v569_v48 = vadd.f32 %v568_v47, %v485_v46  ;;  %v866_v49 = vpop.f32.mrf.mxu0 }
  0xff   : > { %v882_v50 = vpop.f32.mrf.mxu1 }
 0x100   : > { %577 = vrot.lane.b32.xlu0 %v569_v48, %s934_s29  ;;  %v488_v51 = vpop.f32.mrf.mxu0 }
 0x101   : > { %v571_v52 = vpop.f32.mrf.mxu1 }
 0x102   : > { %v572_v53 = vadd.f32 %v571_v52, %v488_v51  ;;  %v867_v54 = vpop.f32.mrf.mxu0 }
 0x103   : > { %v883_v55 = vpop.f32.mrf.mxu1 }
 0x104   : > { %579 = vrot.lane.b32.xlu0 %v572_v53, %s934_s29 }
 0x172   : > { %v578_v56 = vpop.permute.xlu0 %577 }
 0x173   : > { %v584_v57 = vsel %vm583_vm3, %v382_v38, %v578_v56 }
 0x174   : > { %v790_v58 = vpack.c.bf16 %v584_v57, %v584_v57  ;;  %v607_v59 = vmul.f32 %v584_v57, %v584_v57  ;;  %v598_v62 = vsel %vm597_vm5, %v584_v57, 0.0 }
 0x176   : > { %595 = vst.msk [vmem:[%s177_s20] sm:$0xf] %vm594_vm4, %v790_v58  ;;  %v580_v60 = vpop.permute.xlu0 %579  ;;  %v609_v3 = vsel %vm597_vm5, %v607_v59, 0.0 }
 0x177   : > { %v585_v61 = vsel %vm583_vm3, %v385_v43, %v580_v60 }
 0x178   : > { %v791_v63 = vpack.c.bf16 %v585_v61, %v585_v61  ;;  %v599_v0 = vsel %vm597_vm5, %v585_v61, 0.0  ;;  %v608_v1 = vmul.f32 %v585_v61, %v585_v61 }
 0x179   : > { %v600_v2 = vadd.f32 %v599_v0, %v598_v62 }
 0x17a   : > { %596 = vst.msk [vmem:[%s177_s20 + $0x4] sm:$0xf] %vm594_vm4, %v791_v63  ;;  %v610_v4 = vsel %vm597_vm5, %v608_v1, 0.0 }
 0x17b   : > { %v601_v5 = vrot.slane %v600_v2, 4  ;;  %v611_v6 = vadd.f32 %v610_v4, %v609_v3 }
 0x17d   : > { %v602_v7 = vadd.f32 %v601_v5, %v600_v2  ;;  %v612_v8 = vrot.slane %v611_v6, 4 }
 0x17f   : > { %v603_v9 = vrot.slane %v602_v7, 2  ;;  %v613_v10 = vadd.f32 %v612_v8, %v611_v6 }
 0x181   : > { %v604_v11 = vadd.f32 %v603_v9, %v602_v7  ;;  %v614_v12 = vrot.slane %v613_v10, 2 }
 0x183   : > { %v605_v13 = vrot.slane %v604_v11, 1  ;;  %v615_v14 = vadd.f32 %v614_v12, %v613_v10 }
 0x185   : > { %v616_v15 = vrot.slane %v615_v14, 1  ;;  %v606_v16 = vadd.f32 %v605_v13, %v604_v11 }
 0x187   : > { %v617_v17 = vadd.f32 %v616_v15, %v615_v14 }
 0x189   : > { %v619_v18 = vsel %vm618_vm6, %v606_v16, %v617_v17 }
 0x18a   : > { %621 = vst.msk [vmem:[%s181_s24] sm:$0x3] %vm620_vm7, %v619_v18 }
 0x18b PF: > { %s14_s12 = sadd.s32 1, %s930_s12  }
 0x18c   : > { %p11_p4 = scmp.ge.s32.totalorder %s14_s12, 4  }
 0x18e   :  { %13 = sbr.rel (!%p11_p4) target bundleno = 1 (0x1), region = 73 }

// kernel: tile.57
= control target key start
LH: loop header
LB: loop body
LE: loop exit
PB: predicated region body
PF: predicated region fallthrough
CT: control target
= control target key end

     0   :  { %s22_s0 = inlined_call_operand.vmem [shape: f32[8], index: 0, kind: input, shape index: {}]   ;;  %s23_s1 = inlined_call_operand.vmem [shape: f32[4,8], index: 1, kind: output, shape index: {}]  }
   0x1   :  { %v4_v0 = vld [vmem:[%s22_s0] ss:$0 sm:$0xff] }
   0x2   :  { %5 = vst [vmem:[%s23_s1] sm:$0xf] %v4_v0 }

// kernel: tile.59
= control target key start
LH: loop header
LB: loop body
LE: loop exit
PB: predicated region body
PF: predicated region fallthrough
CT: control target
= control target key end

     0   :  { %vm8_vm0 = vcmask 64512   ;;  %s40_s8 = smov 8   ;;  %s41_s9 = smov 16   ;;  %vm14_vm1 = vcmask 261312   ;;  %vm20_vm2 = vcmask 195712   ;;  %vm26_vm3 = vcmask 130112   ;;  %s58_s0 = inlined_call_operand.vmem [shape: f32[4,8], index: 0, kind: input, shape index: {}]   ;;  %s59_s1 = inlined_call_operand.vmem [shape: f32[1,32], index: 1, kind: output, shape index: {}]  }
   0x1   :  { %v5_v0 = vld [vmem:[%s58_s0] sm:$0xf]  ;;  %s39_s0 = smov 24  }
   0x2   :  { %6 = vst [vmem:[#allocation1] sm:$0xf] %v5_v0 }
   0x9   :  { %v11_v1 = vld [vmem:[#allocation1 + $0x3] sm:$0x1]   ;;  %v23_v2 = vld [vmem:[#allocation1 + $0x1] sm:$0x1]   ;;  %v7_v3 = vld [vmem:[#allocation1] sm:$0x1]  }
   0xa   :  { %12 = vrot.lane.b32.xlu0 %v11_v1, %s39_s0  ;;  %24 = vrot.lane.b32.xlu1 %v23_v2, %s40_s8  ;;  %v17_v4 = vld [vmem:[#allocation1 + $0x2] sm:$0x1]   ;;  %9 = vst.msk [vmem:[#allocation0] sm:$0x1] %vm8_vm0, %v7_v3  }
   0xe   :  { %18 = vrot.lane.b32.xlu0 %v17_v4, %s41_s9 }
  0x7c   :  { %v13_v5 = vpop.permute.xlu0 %12   ;;  %v25_v6 = vpop.permute.xlu1 %24  }
  0x7d   :  { %15 = vst.msk [vmem:[#allocation0] sm:$0x1] %vm14_vm1, %v13_v5  }
  0x80   :  { %v19_v7 = vpop.permute.xlu0 %18  }
  0x81   :  { %21 = vst.msk [vmem:[#allocation0] sm:$0x1] %vm20_vm2, %v19_v7  }
  0x82   :  { %27 = vst.msk [vmem:[#allocation0] sm:$0x1] %vm26_vm3, %v25_v6  }
  0x89   :  { %v32_v8 = vld [vmem:[#allocation0] sm:$0x1] }
  0x8a   :  { %35 = vst [vmem:[%s59_s1] sm:$0x1] %v32_v8 }

// kernel: generator_forward.11
= control target key start
LH: loop header
LB: loop body
LE: loop exit
PB: predicated region body
PF: predicated region fallthrough
CT: control target
= control target key end

     0   :  { %s1098_s12 = smov 0   ;;  %s1247_s0 = inlined_call_operand.vmem [shape: bf16[2,80,48], index: 0, kind: input, shape index: {}]   ;;  %s1248_s1 = inlined_call_operand.vmem [shape: bf16[2,2,48,16], index: 1, kind: input, shape index: {}]   ;;  %s1249_s2 = inlined_call_operand.vmem [shape: bf16[2,64,32], index: 2, kind: output, shape index: {0}]   ;;  %s1250_s3 = inlined_call_operand.vmem [shape: f32[2,2,32], index: 3, kind: output, shape index: {1}]  }
   0x1 LB: > { %s865_s13 = sadd.s32 4294967295, %s1075_s12   ;;  %p869_p0 = scmp.ge.s32.totalorder %s1075_s12, 1  ;;  %s1075_s12 = sphi %s1098_s12, %s14_s12  }
   0x2   : > { %p140_p1 = scmp.lt.s32.totalorder %s1075_s12, 3 }
   0x4   : > { %p141_p2 = pnand %p869_p0, %p140_p1 }
   0x5   : > { %p168_p3 = scmp.lt.s32.totalorder (!%p141_p2), %s865_s13, 1  ;;  %s1077_s17 = smov (!%p141_p2), 16  }
   0x6   : > { %144 = sbr.rel (%p141_p2) target bundleno = 389 (0x185), region = 28 }
   0xb   : > { %v1045_v0 = vld [vmem:[%s1248_s1 + $0x28] sm:$0xff]   ;;  %v1046_v1 = vld [vmem:[%s1248_s1 + $0x10] sm:$0xff]   ;;  %v1047_v2 = vld [vmem:[%s1248_s1 + $0x20] sm:$0xff]   ;;  %s1252_s13 = smov (!%p168_p3, %s865_s13), 1  ;;  %vm243_vm0 = vcmask 392192   ;;  %vm674_vm1 = vcmask 130048  }
   0xc   : > { %979 = vmatprep.subr.bf16.mxu0 %v1045_v0  ;;  %993 = vmatprep.subr.bf16.mxu1 %v1046_v1  ;;  %v1048_v3 = vld [vmem:[%s1248_s1 + $0x8] sm:$0xff]   ;;  %v1049_v4 = vld [vmem:[%s1248_s1 + $0x18] sm:$0xff]   ;;  %s1035_s24 = smul.u32 40, %s1252_s13  ;;  %v1050_v5 = vld [vmem:[%s1248_s1] sm:$0xff]   ;;  %s942_s18 = sshll.u32 %s1252_s13, 5  ;;  %vm715_vm2 = vcmask 257024  }
   0xd   : > { %980 = vmatpush3.bf16.msra.mxu0 %v1045_v0  ;;  %994 = vmatpush3.bf16.msra.mxu1 %v1046_v1  ;;  %v1055_v6 = vld [vmem:[%s1248_s1 + $0x58] sm:$0xff]   ;;  %v1056_v14 = vld [vmem:[%s1248_s1 + $0x40] sm:$0xff]   ;;  %v1057_v18 = vld [vmem:[%s1248_s1 + $0x50] sm:$0xff]   ;;  %s1193_s21 = scalar_lea.vmem %s1249_s2, %s942_s18  ;;  %vm724_vm3 = vcmask 261120   ;;  %s873_s22 = sshll.u32 %s1252_s13, 1  ;;  %vm775_vm4 = vcmask 1040384  }
   0xe   : > { %981 = vmatprep.subr.bf16.mxu0 %v1047_v2  ;;  %995 = vmatprep.subr.bf16.mxu1 %v1048_v3  ;;  %s1130_s29 = scalar_lea.vmem %s1247_s0, %s1035_s24  ;;  %v1058_v20 = vld [vmem:[%s1248_s1 + $0x38] sm:$0xff]   ;;  %v1063_v25 = vld [vmem:[%s1248_s1 + $0x48] sm:$0xff]   ;;  %v1064_v26 = vld [vmem:[%s1248_s1 + $0x30] sm:$0xff]   ;;  %s181_s25 = scalar_lea.vmem %s1250_s3, %s873_s22  ;;  %vm777_vm5 = vcmask 254976  }
   0xf   : > { %v183_v7 = vld [vmem:[%s1130_s29 + $0x4] sm:$0xf]  ;;  %v197_v8 = vld [vmem:[%s1130_s29] sm:$0xf]  ;;  %v184_v9 = vld [vmem:[%s1130_s29 + $0x8] sm:$0xf] }
  0x10   : > { %v880_v10 = vcombine.low %v197_v8, %v183_v7  ;;  %v185_v11 = vld [vmem:[%s1130_s29 + $0xc] sm:$0xf]  ;;  %v186_v12 = vld [vmem:[%s1130_s29 + $0x10] sm:$0xf]  ;;  %v891_v13 = vcombine.low %v183_v7, %v184_v9  ;;  %v187_v17 = vld [vmem:[%s1130_s29 + $0x14] sm:$0xf] }
  0x11   : > { %982 = vmatpush3.bf16.msra.mxu0 %v1047_v2  ;;  %996 = vmatpush3.bf16.msra.mxu1 %v1048_v3  ;;  %v881_v15 = vcombine.low %v184_v9, %v185_v11  ;;  %v892_v16 = vcombine.low %v185_v11, %v186_v12  ;;  %v188_v19 = vld [vmem:[%s1130_s29 + $0x18] sm:$0xf]  ;;  %v882_v21 = vcombine.low %v186_v12, %v187_v17  ;;  %v189_v23 = vld [vmem:[%s1130_s29 + $0x1c] sm:$0xf]  ;;  %v190_v24 = vld [vmem:[%s1130_s29 + $0x20] sm:$0xf] }
  0x12   : > { %983 = vmatprep.subr.bf16.mxu0 %v1049_v4  ;;  %997 = vmatprep.subr.bf16.mxu1 %v1050_v5  ;;  %v893_v22 = vcombine.low %v187_v17, %v188_v19  ;;  %v883_v27 = vcombine.low %v188_v19, %v189_v23  ;;  %v894_v28 = vcombine.low %v189_v23, %v190_v24  ;;  %v1065_v29 = vld [vmem:[%s1130_s29 + $0x8] sm:$0xff]   ;;  %v1066_v30 = vld [vmem:[%s1130_s29 + $0x10] sm:$0xff]   ;;  %v1067_v31 = vld [vmem:[%s1130_s29 + $0x18] sm:$0xff]  }
  0x13   : > { %985 = vmatprep.mubr.msk.bf16.mxu0 %vm243_vm0, %v880_v10  ;;  %999 = vmatprep.mubr.msk.bf16.mxu1 %vm243_vm0, %v891_v13  ;;  %v1068_v32 = vld [vmem:[%s1130_s29 + $0x20] sm:$0xff]  }
  0x15   : > { %984 = vmatpush3.bf16.msra.mxu0 %v1049_v4  ;;  %998 = vmatpush3.bf16.msra.mxu1 %v1050_v5 }
  0x16   : > { %1007 = vmatprep.subr.bf16.mxu0 %v1055_v6  ;;  %1021 = vmatprep.subr.bf16.mxu1 %v1056_v14 }
  0x18   : > { %986 = vmatmul.mubr.msk.bf16.vlgmr.msra.gmra.mxu0 %vm243_vm0, %v881_v15  ;;  %1000 = vmatmul.mubr.msk.bf16.vlgmr.msra.gmra.mxu1 %vm243_vm0, %v892_v16 }
  0x19   : > { %1008 = vmatpush3.bf16.msra.mxu0 %v1055_v6  ;;  %1022 = vmatpush3.bf16.msra.mxu1 %v1056_v14 }
  0x1a   : > { %1009 = vmatprep.subr.bf16.mxu0 %v1057_v18  ;;  %1023 = vmatprep.subr.bf16.mxu1 %v1058_v20 }
  0x1b   : > { %989 = vmatprep.mubr.msk.bf16.mxu0 %vm243_vm0, %v882_v21  ;;  %1003 = vmatprep.mubr.msk.bf16.mxu1 %vm243_vm0, %v893_v22 }
  0x1d   : > { %1010 = vmatpush3.bf16.msra.mxu0 %v1057_v18  ;;  %1024 = vmatpush3.bf16.msra.mxu1 %v1058_v20 }
  0x1e   : > { %1011 = vmatprep.subr.bf16.mxu0 %v1063_v25  ;;  %1025 = vmatprep.subr.bf16.mxu1 %v1064_v26 }
  0x20   : > { %990 = vmatmul.mubr.msk.bf16.gmra.mxu0 %vm243_vm0, %v883_v27  ;;  %1004 = vmatmul.mubr.msk.bf16.gmra.mxu1 %vm243_vm0, %v894_v28 }
  0x21   : > { %1012 = vmatpush3.bf16.msra.mxu0 %v1063_v25  ;;  %1026 = vmatpush3.bf16.msra.mxu1 %v1064_v26 }
  0x22   : > { %1013 = vmatprep.mubr.msk.bf16.mxu0 %vm243_vm0, %v891_v13  ;;  %1027 = vmatprep.mubr.msk.bf16.mxu1 %vm243_vm0, %v1065_v29 }
  0x28   : > { %1014 = vmatmul.mubr.msk.bf16.vlgmr.msra.gmra.mxu0 %vm243_vm0, %v892_v16  ;;  %1028 = vmatmul.mubr.msk.bf16.vlgmr.msra.gmra.mxu1 %vm243_vm0, %v1066_v30 }
  0x29   : > { %1017 = vmatprep.mubr.msk.bf16.mxu0 %vm243_vm0, %v893_v22  ;;  %1031 = vmatprep.mubr.msk.bf16.mxu1 %vm243_vm0, %v1067_v31 }
  0x30   : > { %1018 = vmatmul.mubr.msk.bf16.gmra.mxu0 %vm243_vm0, %v894_v28  ;;  %1032 = vmatmul.mubr.msk.bf16.gmra.mxu1 %vm243_vm0, %v1068_v32 }
  0xd8   : > { %v987_v33 = vpop.f32.mrf.mxu0  ;;  %v1001_v34 = vpop.f32.mrf.mxu1 }
  0xd9   : > { %v400_v35 = vadd.f32 %v1001_v34, %v987_v33 }
  0xda   : > { %v290_v36 = vpop.f32.mrf.mxu0  ;;  %v391_v37 = vpop.f32.mrf.mxu1 }
  0xdb   : > { %v392_v38 = vadd.f32 %v391_v37, %v290_v36 }
  0xdc   : > { %v988_v39 = vpop.f32.mrf.mxu0  ;;  %v1002_v40 = vpop.f32.mrf.mxu1 }
  0xdd   : > { %v403_v41 = vadd.f32 %v1002_v40, %v988_v39 }
  0xde   : > { %v293_v42 = vpop.f32.mrf.mxu0  ;;  %v394_v43 = vpop.f32.mrf.mxu1 }
  0xdf   : > { %v1179_v44 = vadd.f32 %v394_v43, %v293_v42 }
  0xe0   : > { %v991_v45 = vpop.f32.mrf.mxu0  ;;  %v1005_v46 = vpop.f32.mrf.mxu1 }
  0xe1   : > { %v1181_v47 = vadd.f32 %v1005_v46, %v991_v45 }
  0xe2   : > { %v306_v48 = vpop.f32.mrf.mxu0  ;;  %v407_v49 = vpop.f32.mrf.mxu1 }
  0xe3   : > { %v1183_v50 = vadd.f32 %v407_v49, %v306_v48 }
  0xe4   : > { %v992_v51 = vpop.f32.mrf.mxu0  ;;  %v1006_v52 = vpop.f32.mrf.mxu1 }
  0xe5   : > { %v1185_v53 = vadd.f32 %v1006_v52, %v992_v51 }
  0xe6   : > { %v309_v54 = vpop.f32.mrf.mxu0  ;;  %v410_v55 = vpop.f32.mrf.mxu1 }
  0xe7   : > { %v1187_v56 = vadd.f32 %v410_v55, %v309_v54 }
  0xe8   : > { %v1015_v57 = vpop.f32.mrf.mxu0  ;;  %v1029_v58 = vpop.f32.mrf.mxu1 }
  0xe9   : > { %v620_v59 = vadd.f32 %v1029_v58, %v1015_v57 }
  0xea   : > { %v496_v60 = vpop.f32.mrf.mxu0  ;;  %v611_v61 = vpop.f32.mrf.mxu1 }
  0xeb   : > { %v612_v62 = vadd.f32 %v611_v61, %v496_v60  ;;  %654 = vrot.lane.b32.xlu1 %v620_v59, %s1077_s17 }
  0xec   : > { %v1016_v63 = vpop.f32.mrf.mxu0  ;;  %v1030_v0 = vpop.f32.mrf.mxu1 }
  0xed   : > { %v623_v1 = vadd.f32 %v1030_v0, %v1016_v63  ;;  %650 = vrot.lane.b32.xlu0 %v612_v62, %s1077_s17 }
  0xee   : > { %v499_v2 = vpop.f32.mrf.mxu0  ;;  %v614_v3 = vpop.f32.mrf.mxu1 }
  0xef   : > { %v615_v4 = vadd.f32 %v614_v3, %v499_v2  ;;  %656 = vrot.lane.b32.xlu1 %v623_v1, %s1077_s17 }
  0xf0   : > { %v1019_v5 = vpop.f32.mrf.mxu0  ;;  %v1033_v6 = vpop.f32.mrf.mxu1 }
  0xf1   : > { %652 = vrot.lane.b32.xlu0 %v615_v4, %s1077_s17  ;;  %v636_v14 = vadd.f32 %v1033_v6, %v1019_v5 }
  0xf2   : > { %v512_v7 = vpop.f32.mrf.mxu0  ;;  %v627_v8 = vpop.f32.mrf.mxu1 }
  0xf3   : > { %v628_v9 = vadd.f32 %v627_v8, %v512_v7 }
  0xf4   : > { %v1020_v10 = vpop.f32.mrf.mxu0  ;;  %v1034_v11 = vpop.f32.mrf.mxu1 }
  0xf5   : > { %658 = vrot.lane.b32.xlu0 %v628_v9, %s1077_s17  ;;  %v639_v16 = vadd.f32 %v1034_v11, %v1020_v10 }
  0xf6   : > { %v515_v12 = vpop.f32.mrf.mxu0  ;;  %v630_v13 = vpop.f32.mrf.mxu1 }
  0xf7   : > { %v631_v15 = vadd.f32 %v630_v13, %v515_v12 }
  0xf9   : > { %662 = vrot.lane.b32.xlu0 %v636_v14, %s1077_s17  ;;  %660 = vrot.lane.b32.xlu1 %v631_v15, %s1077_s17 }
  0xfd   : > { %664 = vrot.lane.b32.xlu1 %v639_v16, %s1077_s17 }
 0x15d   : > { %v655_v17 = vpop.permute.xlu1 %654 }
 0x15e   : > { %v677_v18 = vsel %vm674_vm1, %v400_v35, %v655_v17 }
 0x15f   : > { %v945_v19 = vpack.c.bf16 %v677_v18, %v677_v18  ;;  %v651_v20 = vpop.permute.xlu0 %650  ;;  %v748_v28 = vmul.f32 %v677_v18, %v677_v18  ;;  %v728_v35 = vsel %vm724_vm3, %v677_v18, 0.0 }
 0x160   : > { %v675_v21 = vsel %vm674_vm1, %v392_v38, %v651_v20 }
 0x161   : > { %718 = vst.msk [vmem:[%s1193_s21 + $0x8] sm:$0xf] %vm715_vm2, %v945_v19  ;;  %v943_v22 = vpack.c.bf16 %v675_v21, %v675_v21  ;;  %v657_v23 = vpop.permute.xlu1 %656  ;;  %v746_v25 = vmul.f32 %v675_v21, %v675_v21  ;;  %v725_v30 = vsel %vm724_vm3, %v675_v21, 0.0  ;;  %v757_v43 = vsel %vm724_vm3, %v748_v28, 0.0 }
 0x162   : > { %v678_v24 = vsel %vm674_vm1, %v403_v41, %v657_v23 }
 0x163   : > { %716 = vst.msk [vmem:[%s1193_s21] sm:$0xf] %vm715_vm2, %v943_v22  ;;  %v946_v26 = vpack.c.bf16 %v678_v24, %v678_v24  ;;  %v653_v27 = vpop.permute.xlu0 %652  ;;  %v754_v36 = vsel %vm724_vm3, %v746_v25, 0.0  ;;  %v749_v37 = vmul.f32 %v678_v24, %v678_v24 }
 0x164   : > { %v676_v29 = vsel %vm674_vm1, %v1179_v44, %v653_v27  ;;  %v730_v44 = vsel %vm724_vm3, %v678_v24, 0.0 }
 0x165   : > { %719 = vst.msk [vmem:[%s1193_s21 + $0xc] sm:$0xf] %vm715_vm2, %v946_v26  ;;  %v944_v31 = vpack.c.bf16 %v676_v29, %v676_v29  ;;  %v726_v32 = vsel %vm724_vm3, %v676_v29, 0.0  ;;  %v747_v33 = vmul.f32 %v676_v29, %v676_v29  ;;  %v759_v51 = vsel %vm724_vm3, %v749_v37, 0.0 }
 0x166   : > { %v727_v34 = vadd.f32 %v726_v32, %v725_v30 }
 0x167   : > { %717 = vst.msk [vmem:[%s1193_s21 + $0x4] sm:$0xf] %vm715_vm2, %v944_v31  ;;  %v755_v38 = vsel %vm724_vm3, %v747_v33, 0.0  ;;  %v659_v39 = vpop.permute.xlu0 %658 }
 0x168   : > { %v729_v40 = vadd.f32 %v728_v35, %v727_v34  ;;  %v756_v41 = vadd.f32 %v755_v38, %v754_v36  ;;  %v679_v42 = vsel %vm674_vm1, %v1183_v50, %v659_v39 }
 0x169   : > { %v947_v45 = vpack.c.bf16 %v679_v42, %v679_v42  ;;  %v750_v46 = vmul.f32 %v679_v42, %v679_v42  ;;  %v732_v52 = vsel %vm724_vm3, %v679_v42, 0.0 }
 0x16a   : > { %v758_v48 = vadd.f32 %v757_v43, %v756_v41  ;;  %v731_v49 = vadd.f32 %v730_v44, %v729_v40 }
 0x16b   : > { %720 = vst.msk [vmem:[%s1193_s21 + $0x10] sm:$0xf] %vm715_vm2, %v947_v45  ;;  %v663_v54 = vpop.permute.xlu0 %662  ;;  %v661_v55 = vpop.permute.xlu1 %660  ;;  %v761_v60 = vsel %vm724_vm3, %v750_v46, 0.0 }
 0x16c   : > { %v760_v57 = vadd.f32 %v759_v51, %v758_v48  ;;  %v733_v50 = vadd.f32 %v732_v52, %v731_v49  ;;  %v681_v58 = vsel %vm674_vm1, %v1181_v47, %v663_v54  ;;  %v680_v59 = vsel %vm674_vm1, %v1187_v56, %v661_v55 }
 0x16d   : > { %v949_v61 = vpack.c.bf16 %v681_v58, %v681_v58  ;;  %v948_v62 = vpack.c.bf16 %v680_v59, %v680_v59  ;;  %v752_v0 = vmul.f32 %v681_v58, %v681_v58  ;;  %v734_v1 = vsel %vm724_vm3, %v680_v59, 0.0 }
 0x16e   : > { %v762_v63 = vadd.f32 %v761_v60, %v760_v57  ;;  %v751_v2 = vmul.f32 %v680_v59, %v680_v59  ;;  %v735_v3 = vadd.f32 %v734_v1, %v733_v50  ;;  %v736_v47 = vsel %vm724_vm3, %v681_v58, 0.0 }
 0x16f   : > { %722 = vst.msk [vmem:[%s1193_s21 + $0x18] sm:$0xf] %vm715_vm2, %v949_v61  ;;  %721 = vst.msk [vmem:[%s1193_s21 + $0x14] sm:$0xf] %vm715_vm2, %v948_v62  ;;  %v665_v4 = vpop.permute.xlu1 %664  ;;  %v765_v10 = vsel %vm724_vm3, %v752_v0, 0.0 }
 0x170   : > { %v763_v56 = vsel %vm724_vm3, %v751_v2, 0.0  ;;  %v682_v5 = vsel %vm674_vm1, %v1185_v53, %v665_v4  ;;  %v737_v8 = vadd.f32 %v736_v47, %v735_v3 }
 0x171   : > { %v764_v6 = vadd.f32 %v763_v56, %v762_v63  ;;  %v950_v7 = vpack.c.bf16 %v682_v5, %v682_v5  ;;  %v738_v9 = vsel %vm724_vm3, %v682_v5, 0.0  ;;  %v753_v11 = vmul.f32 %v682_v5, %v682_v5 }
 0x172   : > { %v739_v12 = vadd.f32 %v738_v9, %v737_v8 }
 0x173   : > { %723 = vst.msk [vmem:[%s1193_s21 + $0x1c] sm:$0xf] %vm715_vm2, %v950_v7  ;;  %v766_v13 = vadd.f32 %v765_v10, %v764_v6  ;;  %v767_v14 = vsel %vm724_vm3, %v753_v11, 0.0 }
 0x174   : > { %v740_v15 = vrot.slane %v739_v12, 4 }
 0x175   : > { %v768_v16 = vadd.f32 %v767_v14, %v766_v13 }
 0x176   : > { %v741_v17 = vadd.f32 %v740_v15, %v739_v12 }
 0x177   : > { %v769_v18 = vrot.slane %v768_v16, 4 }
 0x178   : > { %v742_v53 = vrot.slane %v741_v17, 2 }
 0x179   : > { %v770_v19 = vadd.f32 %v769_v18, %v768_v16 }
 0x17a   : > { %v743_v20 = vadd.f32 %v742_v53, %v741_v17 }
 0x17b   : > { %v771_v21 = vrot.slane %v770_v19, 2 }
 0x17c   : > { %v744_v22 = vrot.slane %v743_v20, 1 }
 0x17d   : > { %v772_v23 = vadd.f32 %v771_v21, %v770_v19 }
 0x17e   : > { %v745_v25 = vadd.f32 %v744_v22, %v743_v20 }
 0x17f   : > { %v773_v24 = vrot.slane %v772_v23, 1 }
 0x181   : > { %v774_v26 = vadd.f32 %v773_v24, %v772_v23 }
 0x183   : > { %v776_v27 = vsel %vm775_vm4, %v745_v25, %v774_v26 }
 0x184   : > { %778 = vst.msk [vmem:[%s181_s25] sm:$0x3] %vm777_vm5, %v776_v27 }
 0x185 PF: > { %s14_s12 = sadd.s32 1, %s1075_s12  }
 0x186   : > { %p11_p4 = scmp.ge.s32.totalorder %s14_s12, 4  }
 0x188   :  { %13 = sbr.rel (!%p11_p4) target bundleno = 1 (0x1), region = 73 }

// kernel: generator_forward.12
= control target key start
LH: loop header
LB: loop body
LE: loop exit
PB: predicated region body
PF: predicated region fallthrough
CT: control target
= control target key end

     0   :  { %vm252_vm3 = vcmask 257024   ;;  %s640_s0 = inlined_call_operand.vmem [shape: bf16[128,32], index: 0, kind: input, shape index: {}]   ;;  %s641_s1 = inlined_call_operand.vmem [shape: f32[1,32], index: 1, kind: input, shape index: {}]   ;;  %s642_s2 = inlined_call_operand.vmem [shape: f32[1,32], index: 2, kind: input, shape index: {}]   ;;  %s643_s3 = inlined_call_operand.vmem [shape: bf16[128,32], index: 3, kind: output, shape index: {}]  }
   0x1   :  { %v324_v0 = vld [vmem:[%s640_s0] sm:$0xff]   ;;  %v355_v4 = vld [vmem:[%s640_s0 + $0x8] sm:$0xff]   ;;  %v356_v5 = vld [vmem:[%s640_s0 + $0x10] sm:$0xff]  }
   0x2   :  { %v420_v1 = vld [vmem:[%s641_s1] ss:$0 sm:$0xff]  ;;  %v325_v2 = vunpack.c.l.bf16 %v324_v0  ;;  %v326_v3 = vunpack.c.h.bf16 %v324_v0  ;;  %v357_v6 = vld [vmem:[%s640_s0 + $0x18] sm:$0xff]   ;;  %v329_v8 = vunpack.c.l.bf16 %v355_v4  ;;  %v330_v9 = vunpack.c.h.bf16 %v355_v4  ;;  %v359_v45 = vld [vmem:[%s640_s0 + $0x28] sm:$0xff]  }
   0x3   :  { %v434_v7 = vld [vmem:[%s642_s2] ss:$0 sm:$0xff]  ;;  %v333_v10 = vunpack.c.l.bf16 %v356_v5  ;;  %v334_v11 = vunpack.c.h.bf16 %v356_v5  ;;  %v337_v14 = vunpack.c.l.bf16 %v357_v6  ;;  %v338_v15 = vunpack.c.h.bf16 %v357_v6  ;;  %v360_v50 = vld [vmem:[%s640_s0 + $0x30] sm:$0xff]   ;;  %v361_v60 = vld [vmem:[%s640_s0 + $0x38] sm:$0xff]  }
   0x4   :  { %v53_v12 = vmul.f32 %v325_v2, %v420_v1  ;;  %v54_v13 = vmul.f32 %v326_v3, %v420_v1  ;;  %v55_v16 = vmul.f32 %v329_v8, %v420_v1  ;;  %v56_v17 = vmul.f32 %v330_v9, %v420_v1  ;;  %v358_v35 = vld [vmem:[%s640_s0 + $0x20] sm:$0xff]  }
   0x5   :  { %v57_v18 = vmul.f32 %v333_v10, %v420_v1  ;;  %v58_v19 = vmul.f32 %v334_v11, %v420_v1  ;;  %v59_v28 = vmul.f32 %v337_v14, %v420_v1  ;;  %v60_v29 = vmul.f32 %v338_v15, %v420_v1 }
   0x6   :  { %v443_v20 = vadd.f32 %v434_v7, %v53_v12  ;;  %v446_v21 = vadd.f32 %v434_v7, %v54_v13  ;;  %v449_v22 = vadd.f32 %v434_v7, %v55_v16  ;;  %v452_v23 = vadd.f32 %v434_v7, %v56_v17 }
   0x7   :  { %v455_v24 = vadd.f32 %v434_v7, %v57_v18  ;;  %v458_v25 = vadd.f32 %v434_v7, %v58_v19  ;;  %v472_v40 = vadd.f32 %v434_v7, %v59_v28  ;;  %v475_v41 = vadd.f32 %v434_v7, %v60_v29 }
   0x8   :  { %v108_v26 = vmin.f32 %v443_v20, 0.0  ;;  %v109_v27 = vmin.f32 %v446_v21, 0.0  ;;  %v110_v30 = vmin.f32 %v449_v22, 0.0  ;;  %v111_v31 = vmin.f32 %v452_v23, 0.0 }
   0x9   :  { %v112_v34 = vmin.f32 %v455_v24, 0.0  ;;  %v113_v38 = vmin.f32 %v458_v25, 0.0  ;;  %v341_v43 = vunpack.c.l.bf16 %v358_v35  ;;  %v342_v44 = vunpack.c.h.bf16 %v358_v35 }
   0xa   :  { %v124_v32 = vmul.f32 1.442695, %v108_v26  ;;  %v126_v33 = vmul.f32 1.442695, %v109_v27  ;;  %v128_v36 = vmul.f32 1.442695, %v110_v30  ;;  %v345_v52 = vunpack.c.l.bf16 %v359_v45 }
   0xb   :  { %v130_v37 = vmul.f32 1.442695, %v111_v31  ;;  %v132_v39 = vmul.f32 1.442695, %v112_v34  ;;  %v134_v42 = vmul.f32 1.442695, %v113_v38  ;;  %v61_v48 = vmul.f32 %v341_v43, %v420_v1 }
   0xc   :  { %362 = vpow2.f32 %v124_v32  ;;  %v114_v46 = vmin.f32 %v472_v40, 0.0  ;;  %v115_v47 = vmin.f32 %v475_v41, 0.0  ;;  %v62_v49 = vmul.f32 %v342_v44, %v420_v1 }
   0xd   :  { %364 = vpow2.f32 %v126_v33  ;;  %v346_v53 = vunpack.c.h.bf16 %v359_v45  ;;  %vm92_vm0 = vcmp.gt.f32.partialorder %v443_v20, 0.0  ;;  %v489_v55 = vadd.f32 %v434_v7, %v61_v48 }
   0xe   :  { %366 = vpow2.f32 %v128_v36  ;;  %v136_v51 = vmul.f32 1.442695, %v114_v46  ;;  %v138_v54 = vmul.f32 1.442695, %v115_v47  ;;  %v492_v56 = vadd.f32 %v434_v7, %v62_v49 }
   0xf   :  { %368 = vpow2.f32 %v130_v37  ;;  %v63_v57 = vmul.f32 %v345_v52, %v420_v1  ;;  %v64_v58 = vmul.f32 %v346_v53, %v420_v1  ;;  %v349_v59 = vunpack.c.l.bf16 %v360_v50 }
  0x10   :  { %370 = vpow2.f32 %v132_v39  ;;  %vm93_vm1 = vcmp.gt.f32.partialorder %v446_v21, 0.0  ;;  %vm94_vm2 = vcmp.gt.f32.partialorder %v449_v22, 0.0  ;;  %v116_v61 = vmin.f32 %v489_v55, 0.0 }
  0x11   :  { %372 = vpow2.f32 %v134_v42  ;;  %v117_v62 = vmin.f32 %v492_v56, 0.0  ;;  %v504_v63 = vadd.f32 %v434_v7, %v63_v57  ;;  %v507_v0 = vadd.f32 %v434_v7, %v64_v58 }
  0x12   :  { %374 = vpow2.f32 %v136_v51  ;;  %v65_v2 = vmul.f32 %v349_v59, %v420_v1  ;;  %v140_v3 = vmul.f32 1.442695, %v116_v61  ;;  %v350_v4 = vunpack.c.h.bf16 %v360_v50 }
  0x13   :  { %376 = vpow2.f32 %v138_v54  ;;  %v353_v5 = vunpack.c.l.bf16 %v361_v60  ;;  %v354_v6 = vunpack.c.h.bf16 %v361_v60  ;;  %vm95_vm4 = vcmp.gt.f32.partialorder %v452_v23, 0.0 }
  0x14   :  { %vm96_vm5 = vcmp.gt.f32.partialorder %v455_v24, 0.0  ;;  %v142_v8 = vmul.f32 1.442695, %v117_v62  ;;  %v118_v9 = vmin.f32 %v504_v63, 0.0  ;;  %378 = vpow2.f32 %v140_v3 }
  0x15   :  { %v119_v10 = vmin.f32 %v507_v0, 0.0  ;;  %v515_v11 = vadd.f32 %v434_v7, %v65_v2  ;;  %v66_v12 = vmul.f32 %v350_v4, %v420_v1  ;;  %v67_v14 = vmul.f32 %v353_v5, %v420_v1 }
  0x16   :  { %380 = vpow2.f32 %v142_v8  ;;  %v144_v13 = vmul.f32 1.442695, %v118_v9  ;;  %v68_v15 = vmul.f32 %v354_v6, %v420_v1  ;;  %vm97_vm6 = vcmp.gt.f32.partialorder %v458_v25, 0.0 }
  0x17   :  { %v146_v17 = vmul.f32 1.442695, %v119_v10  ;;  %v120_v18 = vmin.f32 %v515_v11, 0.0  ;;  %v523_v19 = vadd.f32 %v434_v7, %v66_v12  ;;  %vm98_vm7 = vcmp.gt.f32.partialorder %v472_v40, 0.0 }
  0x18   :  { %vm99_vm8 = vcmp.gt.f32.partialorder %v475_v41, 0.0  ;;  %382 = vpow2.f32 %v144_v13  ;;  %v528_v30 = vadd.f32 %v434_v7, %v67_v14  ;;  %v535_v35 = vadd.f32 %v434_v7, %v68_v15 }
  0x19   :  { %v363_v16 = vpop.eup %362  ;;  %384 = vpow2.f32 %v146_v17  ;;  %v148_v1 = vmul.f32 1.442695, %v120_v18  ;;  %v121_v34 = vmin.f32 %v523_v19, 0.0  ;;  %vm100_vm9 = vcmp.gt.f32.partialorder %v489_v55, 0.0 }
  0x1a   :  { %v365_v26 = vpop.eup %364  ;;  %v275_v27 = vadd.f32 -1.0, %v363_v16  ;;  %v122_v48 = vmin.f32 %v528_v30, 0.0  ;;  %v123_v58 = vmin.f32 %v535_v35, 0.0  ;;  %vm101_vm10 = vcmp.gt.f32.partialorder %v492_v56, 0.0 }
  0x1b   :  { %v367_v28 = vpop.eup %366  ;;  %v276_v29 = vadd.f32 -1.0, %v365_v26  ;;  %386 = vpow2.f32 %v148_v1  ;;  %v150_v45 = vmul.f32 1.442695, %v121_v34  ;;  %vm102_vm11 = vcmp.gt.f32.partialorder %v504_v63, 0.0 }
  0x1c   :  { %v369_v31 = vpop.eup %368  ;;  %v172_v32 = vsel %vm92_vm0, %v443_v20, %v275_v27  ;;  %v277_v33 = vadd.f32 -1.0, %v367_v28  ;;  %v152_v54 = vmul.f32 1.442695, %v122_v48  ;;  %v154_v61 = vmul.f32 1.442695, %v123_v58 }
  0x1d   :  { %v371_v36 = vpop.eup %370  ;;  %v307_v37 = vpack.c.bf16 %v172_v32, %v172_v32  ;;  %v173_v38 = vsel %vm93_vm1, %v446_v21, %v276_v29  ;;  %v278_v39 = vadd.f32 -1.0, %v369_v31  ;;  %388 = vpow2.f32 %v150_v45 }
  0x1e   :  { %v373_v42 = vpop.eup %372  ;;  %v308_v43 = vpack.c.bf16 %v173_v38, %v173_v38  ;;  %v174_v20 = vsel %vm94_vm2, %v449_v22, %v277_v33  ;;  %v279_v44 = vadd.f32 -1.0, %v371_v36  ;;  %390 = vpow2.f32 %v152_v54 }
  0x1f   :  { %v375_v46 = vpop.eup %374  ;;  %253 = vst.msk [vmem:[%s643_s3] sm:$0xf] %vm252_vm3, %v307_v37  ;;  %v309_v7 = vpack.c.bf16 %v174_v20, %v174_v20  ;;  %v175_v21 = vsel %vm95_vm4, %v452_v23, %v278_v39  ;;  %v280_v47 = vadd.f32 -1.0, %v373_v42  ;;  %392 = vpow2.f32 %v154_v61 }
  0x20   :  { %v377_v49 = vpop.eup %376  ;;  %254 = vst.msk [vmem:[%s643_s3 + $0x4] sm:$0xf] %vm252_vm3, %v308_v43  ;;  %v310_v22 = vpack.c.bf16 %v175_v21, %v175_v21  ;;  %v176_v50 = vsel %vm96_vm5, %v455_v24, %v279_v44  ;;  %v281_v51 = vadd.f32 -1.0, %v375_v46  ;;  %vm103_vm12 = vcmp.gt.f32.partialorder %v507_v0, 0.0 }
  0x21   :  { %255 = vst.msk [vmem:[%s643_s3 + $0x8] sm:$0xf] %vm252_vm3, %v309_v7  ;;  %v311_v23 = vpack.c.bf16 %v176_v50, %v176_v50  ;;  %v177_v52 = vsel %vm97_vm6, %v458_v25, %v280_v47  ;;  %v282_v53 = vadd.f32 -1.0, %v377_v49  ;;  %v379_v60 = vpop.eup %378  ;;  %vm104_vm13 = vcmp.gt.f32.partialorder %v515_v11, 0.0 }
  0x22   :  { %256 = vst.msk [vmem:[%s643_s3 + $0xc] sm:$0xf] %vm252_vm3, %v310_v22  ;;  %v312_v24 = vpack.c.bf16 %v177_v52, %v177_v52  ;;  %v178_v57 = vsel %vm98_vm7, %v472_v40, %v281_v51  ;;  %v283_v2 = vadd.f32 -1.0, %v379_v60  ;;  %vm105_vm14 = vcmp.gt.f32.partialorder %v523_v19, 0.0 }
  0x23   :  { %257 = vst.msk [vmem:[%s643_s3 + $0x10] sm:$0xf] %vm252_vm3, %v311_v23  ;;  %v313_v25 = vpack.c.bf16 %v178_v57, %v178_v57  ;;  %v179_v59 = vsel %vm99_vm8, %v475_v41, %v282_v53  ;;  %v381_v62 = vpop.eup %380  ;;  %vm106_vm15 = vcmp.gt.f32.partialorder %v528_v30, 0.0  ;;  %vm107_vm0 = vcmp.gt.f32.partialorder %v535_v35, 0.0 }
  0x24   :  { %258 = vst.msk [vmem:[%s643_s3 + $0x14] sm:$0xf] %vm252_vm3, %v312_v24  ;;  %v314_v40 = vpack.c.bf16 %v179_v59, %v179_v59  ;;  %v284_v41 = vadd.f32 -1.0, %v381_v62  ;;  %v180_v4 = vsel %vm100_vm9, %v489_v55, %v283_v2 }
  0x25   :  { %259 = vst.msk [vmem:[%s643_s3 + $0x18] sm:$0xf] %vm252_vm3, %v313_v25  ;;  %v383_v3 = vpop.eup %382  ;;  %v315_v6 = vpack.c.bf16 %v180_v4, %v180_v4 }
  0x26   :  { %260 = vst.msk [vmem:[%s643_s3 + $0x1c] sm:$0xf] %vm252_vm3, %v314_v40  ;;  %v385_v5 = vpop.eup %384  ;;  %v181_v8 = vsel %vm101_vm10, %v492_v56, %v284_v41  ;;  %v285_v9 = vadd.f32 -1.0, %v383_v3 }
  0x27   :  { %v316_v10 = vpack.c.bf16 %v181_v8, %v181_v8  ;;  %v286_v12 = vadd.f32 -1.0, %v385_v5  ;;  %261 = vst.msk [vmem:[%s643_s3 + $0x20] sm:$0xf] %vm252_vm3, %v315_v6 }
  0x28   :  { %v387_v13 = vpop.eup %386  ;;  %v182_v14 = vsel %vm102_vm11, %v504_v63, %v285_v9 }
  0x29   :  { %262 = vst.msk [vmem:[%s643_s3 + $0x24] sm:$0xf] %vm252_vm3, %v316_v10  ;;  %v317_v55 = vpack.c.bf16 %v182_v14, %v182_v14  ;;  %v183_v56 = vsel %vm103_vm12, %v507_v0, %v286_v12  ;;  %v287_v15 = vadd.f32 -1.0, %v387_v13 }
  0x2a   :  { %v318_v16 = vpack.c.bf16 %v183_v56, %v183_v56  ;;  %v389_v17 = vpop.eup %388 }
  0x2b   :  { %263 = vst.msk [vmem:[%s643_s3 + $0x28] sm:$0xf] %vm252_vm3, %v317_v55  ;;  %v184_v63 = vsel %vm104_vm13, %v515_v11, %v287_v15  ;;  %v288_v26 = vadd.f32 -1.0, %v389_v17  ;;  %v391_v0 = vpop.eup %390 }
  0x2c   :  { %264 = vst.msk [vmem:[%s643_s3 + $0x2c] sm:$0xf] %vm252_vm3, %v318_v16  ;;  %v319_v18 = vpack.c.bf16 %v184_v63, %v184_v63  ;;  %v289_v28 = vadd.f32 -1.0, %v391_v0  ;;  %v393_v29 = vpop.eup %392 }
  0x2d   :  { %v185_v27 = vsel %vm105_vm14, %v523_v19, %v288_v26  ;;  %v290_v32 = vadd.f32 -1.0, %v393_v29 }
  0x2e   :  { %265 = vst.msk [vmem:[%s643_s3 + $0x30] sm:$0xf] %vm252_vm3, %v319_v18  ;;  %v320_v11 = vpack.c.bf16 %v185_v27, %v185_v27  ;;  %v186_v1 = vsel %vm106_vm15, %v528_v30, %v289_v28 }
  0x2f   :  { %v321_v31 = vpack.c.bf16 %v186_v1, %v186_v1  ;;  %v187_v19 = vsel %vm107_vm0, %v535_v35, %v290_v32 }
  0x30   :  { %266 = vst.msk [vmem:[%s643_s3 + $0x34] sm:$0xf] %vm252_vm3, %v320_v11  ;;  %v322_v33 = vpack.c.bf16 %v187_v19, %v187_v19 }
  0x31   :  { %267 = vst.msk [vmem:[%s643_s3 + $0x38] sm:$0xf] %vm252_vm3, %v321_v31 }
  0x32   :  { %268 = vst.msk [vmem:[%s643_s3 + $0x3c] sm:$0xf] %vm252_vm3, %v322_v33 }

// kernel: generator_forward.13
= control target key start
LH: loop header
LB: loop body
LE: loop exit
PB: predicated region body
PF: predicated region fallthrough
CT: control target
= control target key end

     0   :  { %vm344_vm0 = vcmask 1043456   ;;  %vm247_vm1 = vcmask 64512   ;;  %s1509_s1 = inlined_call_operand.vmem [shape: bf16[8,128], index: 1, kind: input, shape index: {}]   ;;  %s1510_s0 = inlined_call_operand.vmem [shape: bf16[512,8], index: 0, kind: input, shape index: {}]   ;;  %s1511_s2 = inlined_call_operand.vmem [shape: f32[1,128], index: 2, kind: input, shape index: {}]   ;;  %s1512_s3 = inlined_call_operand.vmem [shape: f32[512,128], index: 3, kind: output, shape index: {}]  }
   0x1   :  { %v79_v0 = vld [vmem:[%s1509_s1] sm:$0xf]  ;;  %v939_v4 = vld [vmem:[%s1510_s0 + $0x8] sm:$0xff]   ;;  %v941_v6 = vld [vmem:[%s1510_s0 + $0x10] sm:$0xff]  }
   0x2   :  { %935 = vmatprep.subr.msk.bf16.mxu0 %vm344_vm0, %v79_v0  ;;  %936 = vmatprep.subr.msk.bf16.mxu1 %vm344_vm0, %v79_v0  ;;  %v346_v1 = vsel %vm344_vm0, %v79_v0, 0  ;;  %v937_v2 = vld [vmem:[%s1510_s0] sm:$0xff]   ;;  %v940_v5 = vld [vmem:[%s1510_s0 + $0x88] sm:$0xff]   ;;  %v942_v7 = vld [vmem:[%s1510_s0 + $0x90] sm:$0xff]  }
   0x3   :  { %868 = vmatpush3.bf16.msra.mxu0 %v346_v1  ;;  %934 = vmatpush3.bf16.msra.mxu1 %v346_v1  ;;  %v938_v3 = vld [vmem:[%s1510_s0 + $0x80] sm:$0xff]   ;;  %v943_v8 = vld [vmem:[%s1510_s0 + $0x18] sm:$0xff]   ;;  %v947_v12 = vld [vmem:[%s1510_s0 + $0x28] sm:$0xff]  }
   0x4   :  { %869 = vmatprep.mubr.msk.bf16.mxu0 %vm247_vm1, %v937_v2  ;;  %901 = vmatprep.mubr.msk.bf16.mxu1 %vm247_vm1, %v938_v3  ;;  %v944_v9 = vld [vmem:[%s1510_s0 + $0x98] sm:$0xff]   ;;  %v945_v10 = vld [vmem:[%s1510_s0 + $0x20] sm:$0xff]   ;;  %v948_v13 = vld [vmem:[%s1510_s0 + $0xa8] sm:$0xff]  }
   0x5   :  { %v946_v11 = vld [vmem:[%s1510_s0 + $0xa0] sm:$0xff]   ;;  %v949_v14 = vld [vmem:[%s1510_s0 + $0x30] sm:$0xff]   ;;  %v951_v16 = vld [vmem:[%s1510_s0 + $0x38] sm:$0xff]  }
   0x6   :  { %870 = vmatmul.mubr.msk.bf16.vlgmr.msra.gmra.mxu0 %vm247_vm1, %v939_v4  ;;  %902 = vmatmul.mubr.msk.bf16.vlgmr.msra.gmra.mxu1 %vm247_vm1, %v940_v5  ;;  %v950_v15 = vld [vmem:[%s1510_s0 + $0xb0] sm:$0xff]   ;;  %v952_v17 = vld [vmem:[%s1510_s0 + $0xb8] sm:$0xff]   ;;  %v953_v18 = vld [vmem:[%s1510_s0 + $0x40] sm:$0xff]  }
   0x7   :  { %873 = vmatprep.mubr.msk.bf16.mxu0 %vm247_vm1, %v941_v6  ;;  %905 = vmatprep.mubr.msk.bf16.mxu1 %vm247_vm1, %v942_v7  ;;  %v954_v19 = vld [vmem:[%s1510_s0 + $0xc0] sm:$0xff]   ;;  %v955_v20 = vld [vmem:[%s1510_s0 + $0x48] sm:$0xff]   ;;  %v957_v22 = vld [vmem:[%s1510_s0 + $0x50] sm:$0xff]  }
   0x8   :  { %v956_v21 = vld [vmem:[%s1510_s0 + $0xc8] sm:$0xff]   ;;  %v958_v23 = vld [vmem:[%s1510_s0 + $0xd0] sm:$0xff]   ;;  %v959_v24 = vld [vmem:[%s1510_s0 + $0x58] sm:$0xff]  }
   0x9   :  { %v960_v25 = vld [vmem:[%s1510_s0 + $0xd8] sm:$0xff]   ;;  %v961_v26 = vld [vmem:[%s1510_s0 + $0x60] sm:$0xff]   ;;  %v963_v28 = vld [vmem:[%s1510_s0 + $0x68] sm:$0xff]  }
   0xa   :  { %v962_v27 = vld [vmem:[%s1510_s0 + $0xe0] sm:$0xff]   ;;  %v964_v29 = vld [vmem:[%s1510_s0 + $0xe8] sm:$0xff]   ;;  %v965_v30 = vld [vmem:[%s1510_s0 + $0x70] sm:$0xff]  }
   0xb   :  { %v966_v31 = vld [vmem:[%s1510_s0 + $0xf0] sm:$0xff]   ;;  %v967_v32 = vld [vmem:[%s1510_s0 + $0x78] sm:$0xff]   ;;  %v1251_v34 = vld [vmem:[%s1511_s2] ss:$0 sm:$0xff] }
   0xc   :  { %v968_v33 = vld [vmem:[%s1510_s0 + $0xf8] sm:$0xff]  }
   0xe   :  { %874 = vmatmul.mubr.msk.bf16.gmra.mxu0 %vm247_vm1, %v943_v8  ;;  %906 = vmatmul.mubr.msk.bf16.gmra.mxu1 %vm247_vm1, %v944_v9 }
   0xf   :  { %877 = vmatprep.mubr.msk.bf16.mxu0 %vm247_vm1, %v945_v10  ;;  %909 = vmatprep.mubr.msk.bf16.mxu1 %vm247_vm1, %v946_v11 }
  0x16   :  { %878 = vmatmul.mubr.msk.bf16.gmra.mxu0 %vm247_vm1, %v947_v12  ;;  %910 = vmatmul.mubr.msk.bf16.gmra.mxu1 %vm247_vm1, %v948_v13 }
  0x17   :  { %881 = vmatprep.mubr.msk.bf16.mxu0 %vm247_vm1, %v949_v14  ;;  %913 = vmatprep.mubr.msk.bf16.mxu1 %vm247_vm1, %v950_v15 }
  0x1e   :  { %882 = vmatmul.mubr.msk.bf16.gmra.mxu0 %vm247_vm1, %v951_v16  ;;  %914 = vmatmul.mubr.msk.bf16.gmra.mxu1 %vm247_vm1, %v952_v17 }
  0x1f   :  { %885 = vmatprep.mubr.msk.bf16.mxu0 %vm247_vm1, %v953_v18  ;;  %917 = vmatprep.mubr.msk.bf16.mxu1 %vm247_vm1, %v954_v19 }
  0x26   :  { %886 = vmatmul.mubr.msk.bf16.gmra.mxu0 %vm247_vm1, %v955_v20  ;;  %918 = vmatmul.mubr.msk.bf16.gmra.mxu1 %vm247_vm1, %v956_v21 }
  0x27   :  { %889 = vmatprep.mubr.msk.bf16.mxu0 %vm247_vm1, %v957_v22  ;;  %921 = vmatprep.mubr.msk.bf16.mxu1 %vm247_vm1, %v958_v23 }
  0x2e   :  { %890 = vmatmul.mubr.msk.bf16.gmra.mxu0 %vm247_vm1, %v959_v24  ;;  %922 = vmatmul.mubr.msk.bf16.gmra.mxu1 %vm247_vm1, %v960_v25 }
  0x2f   :  { %893 = vmatprep.mubr.msk.bf16.mxu0 %vm247_vm1, %v961_v26  ;;  %925 = vmatprep.mubr.msk.bf16.mxu1 %vm247_vm1, %v962_v27 }
  0x36   :  { %894 = vmatmul.mubr.msk.bf16.gmra.mxu0 %vm247_vm1, %v963_v28  ;;  %926 = vmatmul.mubr.msk.bf16.gmra.mxu1 %vm247_vm1, %v964_v29 }
  0x37   :  { %897 = vmatprep.mubr.msk.bf16.mxu0 %vm247_vm1, %v965_v30  ;;  %929 = vmatprep.mubr.msk.bf16.mxu1 %vm247_vm1, %v966_v31 }
  0x3e   :  { %898 = vmatmul.mubr.msk.bf16.gmra.mxu0 %vm247_vm1, %v967_v32  ;;  %930 = vmatmul.mubr.msk.bf16.gmra.mxu1 %vm247_vm1, %v968_v33 }
  0xc6   :  { %v871_v35 = vpop.f32.mrf.mxu0  ;;  %v903_v37 = vpop.f32.mrf.mxu1 }
  0xc7   :  { %v391_v36 = vadd.f32 %v871_v35, %v1251_v34  ;;  %v519_v38 = vadd.f32 %v903_v37, %v1251_v34 }
  0xc8   :  { %v382_v39 = vpop.f32.mrf.mxu0  ;;  %v510_v41 = vpop.f32.mrf.mxu1 }
  0xc9   :  { %969 = vtanh.f32 %v391_v36  ;;  %v383_v40 = vadd.f32 %v1251_v34, %v382_v39  ;;  %v511_v42 = vadd.f32 %v1251_v34, %v510_v41 }
  0xca   :  { %971 = vtanh.f32 %v519_v38  ;;  %v872_v43 = vpop.f32.mrf.mxu0  ;;  %v904_v45 = vpop.f32.mrf.mxu1 }
  0xcb   :  { %973 = vtanh.f32 %v383_v40  ;;  %v394_v44 = vadd.f32 %v872_v43, %v1251_v34  ;;  %v522_v46 = vadd.f32 %v904_v45, %v1251_v34 }
  0xcc   :  { %975 = vtanh.f32 %v511_v42  ;;  %v385_v47 = vpop.f32.mrf.mxu0  ;;  %v513_v49 = vpop.f32.mrf.mxu1 }
  0xcd   :  { %977 = vtanh.f32 %v394_v44  ;;  %v386_v48 = vadd.f32 %v1251_v34, %v385_v47  ;;  %v514_v50 = vadd.f32 %v1251_v34, %v513_v49 }
  0xce   :  { %979 = vtanh.f32 %v522_v46  ;;  %v875_v51 = vpop.f32.mrf.mxu0  ;;  %v907_v53 = vpop.f32.mrf.mxu1 }
  0xcf   :  { %981 = vtanh.f32 %v386_v48  ;;  %v407_v52 = vadd.f32 %v875_v51, %v1251_v34  ;;  %v535_v54 = vadd.f32 %v907_v53, %v1251_v34 }
  0xd0   :  { %983 = vtanh.f32 %v514_v50  ;;  %v398_v55 = vpop.f32.mrf.mxu0  ;;  %v526_v57 = vpop.f32.mrf.mxu1 }
  0xd1   :  { %985 = vtanh.f32 %v407_v52  ;;  %v399_v56 = vadd.f32 %v1251_v34, %v398_v55  ;;  %v527_v58 = vadd.f32 %v1251_v34, %v526_v57 }
  0xd2   :  { %987 = vtanh.f32 %v535_v54  ;;  %v876_v59 = vpop.f32.mrf.mxu0  ;;  %v908_v61 = vpop.f32.mrf.mxu1 }
  0xd3   :  { %989 = vtanh.f32 %v399_v56  ;;  %v410_v60 = vadd.f32 %v876_v59, %v1251_v34  ;;  %v538_v62 = vadd.f32 %v908_v61, %v1251_v34 }
  0xd4   :  { %991 = vtanh.f32 %v527_v58  ;;  %v401_v63 = vpop.f32.mrf.mxu0  ;;  %v529_v1 = vpop.f32.mrf.mxu1 }
  0xd5   :  { %993 = vtanh.f32 %v410_v60  ;;  %v402_v0 = vadd.f32 %v1251_v34, %v401_v63  ;;  %v530_v3 = vadd.f32 %v1251_v34, %v529_v1 }
  0xd6   :  { %v970_v2 = vpop.eup %969  ;;  %995 = vtanh.f32 %v538_v62  ;;  %v879_v4 = vpop.f32.mrf.mxu0 }
  0xd7   :  { %v972_v5 = vpop.eup %971  ;;  %703 = vst [vmem:[%s1512_s3 + $0x10] sm:$0xff] %v970_v2  ;;  %997 = vtanh.f32 %v402_v0  ;;  %v423_v6 = vadd.f32 %v879_v4, %v1251_v34  ;;  %v911_v7 = vpop.f32.mrf.mxu1 }
  0xd8   :  { %v974_v8 = vpop.eup %973  ;;  %735 = vst [vmem:[%s1512_s3 + $0x110] sm:$0xff] %v972_v5  ;;  %999 = vtanh.f32 %v530_v3  ;;  %v551_v9 = vadd.f32 %v911_v7, %v1251_v34  ;;  %v414_v10 = vpop.f32.mrf.mxu0 }
  0xd9   :  { %v976_v11 = vpop.eup %975  ;;  %701 = vst [vmem:[%s1512_s3] sm:$0xff] %v974_v8  ;;  %1001 = vtanh.f32 %v423_v6  ;;  %v415_v12 = vadd.f32 %v1251_v34, %v414_v10  ;;  %v542_v13 = vpop.f32.mrf.mxu1 }
  0xda   :  { %v978_v14 = vpop.eup %977  ;;  %733 = vst [vmem:[%s1512_s3 + $0x100] sm:$0xff] %v976_v11  ;;  %1003 = vtanh.f32 %v551_v9  ;;  %v543_v15 = vadd.f32 %v1251_v34, %v542_v13  ;;  %v880_v16 = vpop.f32.mrf.mxu0 }
  0xdb   :  { %v980_v17 = vpop.eup %979  ;;  %704 = vst [vmem:[%s1512_s3 + $0x18] sm:$0xff] %v978_v14  ;;  %1005 = vtanh.f32 %v415_v12  ;;  %v426_v18 = vadd.f32 %v880_v16, %v1251_v34  ;;  %v912_v19 = vpop.f32.mrf.mxu1 }
  0xdc   :  { %v982_v20 = vpop.eup %981  ;;  %736 = vst [vmem:[%s1512_s3 + $0x118] sm:$0xff] %v980_v17  ;;  %1007 = vtanh.f32 %v543_v15  ;;  %v554_v21 = vadd.f32 %v912_v19, %v1251_v34  ;;  %v417_v22 = vpop.f32.mrf.mxu0 }
  0xdd   :  { %v984_v23 = vpop.eup %983  ;;  %702 = vst [vmem:[%s1512_s3 + $0x8] sm:$0xff] %v982_v20  ;;  %1009 = vtanh.f32 %v426_v18  ;;  %v418_v24 = vadd.f32 %v1251_v34, %v417_v22  ;;  %v545_v25 = vpop.f32.mrf.mxu1 }
  0xde   :  { %v986_v26 = vpop.eup %985  ;;  %734 = vst [vmem:[%s1512_s3 + $0x108] sm:$0xff] %v984_v23  ;;  %1011 = vtanh.f32 %v554_v21  ;;  %v546_v27 = vadd.f32 %v1251_v34, %v545_v25  ;;  %v883_v28 = vpop.f32.mrf.mxu0 }
  0xdf   :  { %v988_v29 = vpop.eup %987  ;;  %707 = vst [vmem:[%s1512_s3 + $0x30] sm:$0xff] %v986_v26  ;;  %1013 = vtanh.f32 %v418_v24  ;;  %v439_v30 = vadd.f32 %v883_v28, %v1251_v34  ;;  %v915_v31 = vpop.f32.mrf.mxu1 }
  0xe0   :  { %v990_v32 = vpop.eup %989  ;;  %739 = vst [vmem:[%s1512_s3 + $0x130] sm:$0xff] %v988_v29  ;;  %1015 = vtanh.f32 %v546_v27  ;;  %v567_v33 = vadd.f32 %v915_v31, %v1251_v34  ;;  %v430_v35 = vpop.f32.mrf.mxu0 }
  0xe1   :  { %v992_v36 = vpop.eup %991  ;;  %705 = vst [vmem:[%s1512_s3 + $0x20] sm:$0xff] %v990_v32  ;;  %1017 = vtanh.f32 %v439_v30  ;;  %v431_v37 = vadd.f32 %v1251_v34, %v430_v35  ;;  %v558_v38 = vpop.f32.mrf.mxu1 }
  0xe2   :  { %v994_v39 = vpop.eup %993  ;;  %737 = vst [vmem:[%s1512_s3 + $0x120] sm:$0xff] %v992_v36  ;;  %1019 = vtanh.f32 %v567_v33  ;;  %v559_v40 = vadd.f32 %v1251_v34, %v558_v38  ;;  %v884_v41 = vpop.f32.mrf.mxu0 }
  0xe3   :  { %v996_v42 = vpop.eup %995  ;;  %708 = vst [vmem:[%s1512_s3 + $0x38] sm:$0xff] %v994_v39  ;;  %1021 = vtanh.f32 %v431_v37  ;;  %v442_v43 = vadd.f32 %v884_v41, %v1251_v34  ;;  %v916_v44 = vpop.f32.mrf.mxu1 }
  0xe4   :  { %v998_v45 = vpop.eup %997  ;;  %740 = vst [vmem:[%s1512_s3 + $0x138] sm:$0xff] %v996_v42  ;;  %1023 = vtanh.f32 %v559_v40  ;;  %v570_v46 = vadd.f32 %v916_v44, %v1251_v34  ;;  %v433_v47 = vpop.f32.mrf.mxu0 }
  0xe5   :  { %v1000_v48 = vpop.eup %999  ;;  %706 = vst [vmem:[%s1512_s3 + $0x28] sm:$0xff] %v998_v45  ;;  %1025 = vtanh.f32 %v442_v43  ;;  %v434_v49 = vadd.f32 %v1251_v34, %v433_v47  ;;  %v561_v50 = vpop.f32.mrf.mxu1 }
  0xe6   :  { %v1002_v51 = vpop.eup %1001  ;;  %738 = vst [vmem:[%s1512_s3 + $0x128] sm:$0xff] %v1000_v48  ;;  %1027 = vtanh.f32 %v570_v46  ;;  %v562_v52 = vadd.f32 %v1251_v34, %v561_v50  ;;  %v887_v53 = vpop.f32.mrf.mxu0 }
  0xe7   :  { %v1004_v54 = vpop.eup %1003  ;;  %711 = vst [vmem:[%s1512_s3 + $0x50] sm:$0xff] %v1002_v51  ;;  %1029 = vtanh.f32 %v434_v49  ;;  %v455_v55 = vadd.f32 %v887_v53, %v1251_v34  ;;  %v919_v56 = vpop.f32.mrf.mxu1 }
  0xe8   :  { %v1006_v57 = vpop.eup %1005  ;;  %743 = vst [vmem:[%s1512_s3 + $0x150] sm:$0xff] %v1004_v54  ;;  %1031 = vtanh.f32 %v562_v52  ;;  %v583_v58 = vadd.f32 %v919_v56, %v1251_v34  ;;  %v446_v59 = vpop.f32.mrf.mxu0 }
  0xe9   :  { %v1008_v60 = vpop.eup %1007  ;;  %709 = vst [vmem:[%s1512_s3 + $0x40] sm:$0xff] %v1006_v57  ;;  %1033 = vtanh.f32 %v455_v55  ;;  %v447_v61 = vadd.f32 %v1251_v34, %v446_v59  ;;  %v574_v62 = vpop.f32.mrf.mxu1 }
  0xea   :  { %v1010_v63 = vpop.eup %1009  ;;  %741 = vst [vmem:[%s1512_s3 + $0x140] sm:$0xff] %v1008_v60  ;;  %1035 = vtanh.f32 %v583_v58  ;;  %v575_v0 = vadd.f32 %v1251_v34, %v574_v62  ;;  %v888_v1 = vpop.f32.mrf.mxu0 }
  0xeb   :  { %v1012_v2 = vpop.eup %1011  ;;  %712 = vst [vmem:[%s1512_s3 + $0x58] sm:$0xff] %v1010_v63  ;;  %1037 = vtanh.f32 %v447_v61  ;;  %v458_v3 = vadd.f32 %v888_v1, %v1251_v34  ;;  %v920_v4 = vpop.f32.mrf.mxu1 }
  0xec   :  { %v1014_v5 = vpop.eup %1013  ;;  %744 = vst [vmem:[%s1512_s3 + $0x158] sm:$0xff] %v1012_v2  ;;  %1039 = vtanh.f32 %v575_v0  ;;  %v586_v6 = vadd.f32 %v920_v4, %v1251_v34  ;;  %v449_v7 = vpop.f32.mrf.mxu0 }
  0xed   :  { %v1016_v8 = vpop.eup %1015  ;;  %710 = vst [vmem:[%s1512_s3 + $0x48] sm:$0xff] %v1014_v5  ;;  %1041 = vtanh.f32 %v458_v3  ;;  %v450_v9 = vadd.f32 %v1251_v34, %v449_v7  ;;  %v577_v10 = vpop.f32.mrf.mxu1 }
  0xee   :  { %v1018_v11 = vpop.eup %1017  ;;  %742 = vst [vmem:[%s1512_s3 + $0x148] sm:$0xff] %v1016_v8  ;;  %1043 = vtanh.f32 %v586_v6  ;;  %v578_v12 = vadd.f32 %v1251_v34, %v577_v10  ;;  %v891_v13 = vpop.f32.mrf.mxu0 }
  0xef   :  { %v1020_v14 = vpop.eup %1019  ;;  %715 = vst [vmem:[%s1512_s3 + $0x70] sm:$0xff] %v1018_v11  ;;  %1045 = vtanh.f32 %v450_v9  ;;  %v471_v15 = vadd.f32 %v891_v13, %v1251_v34  ;;  %v923_v16 = vpop.f32.mrf.mxu1 }
  0xf0   :  { %v1022_v17 = vpop.eup %1021  ;;  %747 = vst [vmem:[%s1512_s3 + $0x170] sm:$0xff] %v1020_v14  ;;  %1047 = vtanh.f32 %v578_v12  ;;  %v599_v18 = vadd.f32 %v923_v16, %v1251_v34  ;;  %v462_v19 = vpop.f32.mrf.mxu0 }
  0xf1   :  { %v1024_v20 = vpop.eup %1023  ;;  %713 = vst [vmem:[%s1512_s3 + $0x60] sm:$0xff] %v1022_v17  ;;  %1049 = vtanh.f32 %v471_v15  ;;  %v463_v21 = vadd.f32 %v1251_v34, %v462_v19  ;;  %v590_v22 = vpop.f32.mrf.mxu1 }
  0xf2   :  { %v1026_v23 = vpop.eup %1025  ;;  %745 = vst [vmem:[%s1512_s3 + $0x160] sm:$0xff] %v1024_v20  ;;  %1051 = vtanh.f32 %v599_v18  ;;  %v591_v24 = vadd.f32 %v1251_v34, %v590_v22  ;;  %v892_v25 = vpop.f32.mrf.mxu0 }
  0xf3   :  { %v1028_v26 = vpop.eup %1027  ;;  %716 = vst [vmem:[%s1512_s3 + $0x78] sm:$0xff] %v1026_v23  ;;  %1053 = vtanh.f32 %v463_v21  ;;  %v474_v27 = vadd.f32 %v892_v25, %v1251_v34  ;;  %v924_v28 = vpop.f32.mrf.mxu1 }
  0xf4   :  { %v1030_v29 = vpop.eup %1029  ;;  %748 = vst [vmem:[%s1512_s3 + $0x178] sm:$0xff] %v1028_v26  ;;  %1055 = vtanh.f32 %v591_v24  ;;  %v602_v30 = vadd.f32 %v924_v28, %v1251_v34  ;;  %v465_v31 = vpop.f32.mrf.mxu0 }
  0xf5   :  { %v1032_v32 = vpop.eup %1031  ;;  %714 = vst [vmem:[%s1512_s3 + $0x68] sm:$0xff] %v1030_v29  ;;  %1057 = vtanh.f32 %v474_v27  ;;  %v466_v33 = vadd.f32 %v1251_v34, %v465_v31  ;;  %v593_v35 = vpop.f32.mrf.mxu1 }
  0xf6   :  { %v1034_v36 = vpop.eup %1033  ;;  %746 = vst [vmem:[%s1512_s3 + $0x168] sm:$0xff] %v1032_v32  ;;  %1059 = vtanh.f32 %v602_v30  ;;  %v594_v37 = vadd.f32 %v1251_v34, %v593_v35  ;;  %v895_v38 = vpop.f32.mrf.mxu0 }
  0xf7   :  { %v1036_v39 = vpop.eup %1035  ;;  %719 = vst [vmem:[%s1512_s3 + $0x90] sm:$0xff] %v1034_v36  ;;  %1061 = vtanh.f32 %v466_v33  ;;  %v487_v40 = vadd.f32 %v895_v38, %v1251_v34  ;;  %v927_v41 = vpop.f32.mrf.mxu1 }
  0xf8   :  { %v1038_v42 = vpop.eup %1037  ;;  %751 = vst [vmem:[%s1512_s3 + $0x190] sm:$0xff] %v1036_v39  ;;  %1063 = vtanh.f32 %v594_v37  ;;  %v615_v43 = vadd.f32 %v927_v41, %v1251_v34  ;;  %v478_v44 = vpop.f32.mrf.mxu0 }
  0xf9   :  { %v1040_v45 = vpop.eup %1039  ;;  %717 = vst [vmem:[%s1512_s3 + $0x80] sm:$0xff] %v1038_v42  ;;  %1065 = vtanh.f32 %v487_v40  ;;  %v479_v46 = vadd.f32 %v1251_v34, %v478_v44  ;;  %v606_v47 = vpop.f32.mrf.mxu1 }
  0xfa   :  { %v1042_v48 = vpop.eup %1041  ;;  %749 = vst [vmem:[%s1512_s3 + $0x180] sm:$0xff] %v1040_v45  ;;  %1067 = vtanh.f32 %v615_v43  ;;  %v607_v49 = vadd.f32 %v1251_v34, %v606_v47  ;;  %v896_v50 = vpop.f32.mrf.mxu0 }
  0xfb   :  { %v1044_v51 = vpop.eup %1043  ;;  %720 = vst [vmem:[%s1512_s3 + $0x98] sm:$0xff] %v1042_v48  ;;  %1069 = vtanh.f32 %v479_v46  ;;  %v490_v52 = vadd.f32 %v896_v50, %v1251_v34  ;;  %v928_v53 = vpop.f32.mrf.mxu1 }
  0xfc   :  { %v1046_v54 = vpop.eup %1045  ;;  %752 = vst [vmem:[%s1512_s3 + $0x198] sm:$0xff] %v1044_v51  ;;  %1071 = vtanh.f32 %v607_v49  ;;  %v618_v55 = vadd.f32 %v928_v53, %v1251_v34  ;;  %v481_v56 = vpop.f32.mrf.mxu0 }
  0xfd   :  { %v1048_v57 = vpop.eup %1047  ;;  %718 = vst [vmem:[%s1512_s3 + $0x88] sm:$0xff] %v1046_v54  ;;  %1073 = vtanh.f32 %v490_v52  ;;  %v482_v58 = vadd.f32 %v1251_v34, %v481_v56  ;;  %v609_v59 = vpop.f32.mrf.mxu1 }
  0xfe   :  { %v1050_v60 = vpop.eup %1049  ;;  %750 = vst [vmem:[%s1512_s3 + $0x188] sm:$0xff] %v1048_v57  ;;  %1075 = vtanh.f32 %v618_v55  ;;  %v610_v61 = vadd.f32 %v1251_v34, %v609_v59  ;;  %v899_v62 = vpop.f32.mrf.mxu0 }
  0xff   :  { %v1052_v63 = vpop.eup %1051  ;;  %723 = vst [vmem:[%s1512_s3 + $0xb0] sm:$0xff] %v1050_v60  ;;  %1077 = vtanh.f32 %v482_v58  ;;  %v503_v0 = vadd.f32 %v899_v62, %v1251_v34  ;;  %v931_v1 = vpop.f32.mrf.mxu1 }
 0x100   :  { %v1054_v2 = vpop.eup %1053  ;;  %755 = vst [vmem:[%s1512_s3 + $0x1b0] sm:$0xff] %v1052_v63  ;;  %1079 = vtanh.f32 %v610_v61  ;;  %v631_v3 = vadd.f32 %v931_v1, %v1251_v34  ;;  %v494_v4 = vpop.f32.mrf.mxu0 }
 0x101   :  { %v1056_v5 = vpop.eup %1055  ;;  %721 = vst [vmem:[%s1512_s3 + $0xa0] sm:$0xff] %v1054_v2  ;;  %1081 = vtanh.f32 %v503_v0  ;;  %v495_v6 = vadd.f32 %v1251_v34, %v494_v4  ;;  %v622_v7 = vpop.f32.mrf.mxu1 }
 0x102   :  { %v1058_v8 = vpop.eup %1057  ;;  %753 = vst [vmem:[%s1512_s3 + $0x1a0] sm:$0xff] %v1056_v5  ;;  %1083 = vtanh.f32 %v631_v3  ;;  %v623_v9 = vadd.f32 %v1251_v34, %v622_v7  ;;  %v900_v10 = vpop.f32.mrf.mxu0 }
 0x103   :  { %v1060_v11 = vpop.eup %1059  ;;  %724 = vst [vmem:[%s1512_s3 + $0xb8] sm:$0xff] %v1058_v8  ;;  %1085 = vtanh.f32 %v495_v6  ;;  %v506_v12 = vadd.f32 %v900_v10, %v1251_v34  ;;  %v932_v13 = vpop.f32.mrf.mxu1 }
 0x104   :  { %v1062_v14 = vpop.eup %1061  ;;  %756 = vst [vmem:[%s1512_s3 + $0x1b8] sm:$0xff] %v1060_v11  ;;  %1087 = vtanh.f32 %v623_v9  ;;  %v634_v15 = vadd.f32 %v932_v13, %v1251_v34  ;;  %v497_v16 = vpop.f32.mrf.mxu0 }
 0x105   :  { %v1064_v17 = vpop.eup %1063  ;;  %722 = vst [vmem:[%s1512_s3 + $0xa8] sm:$0xff] %v1062_v14  ;;  %1089 = vtanh.f32 %v506_v12  ;;  %v498_v18 = vadd.f32 %v1251_v34, %v497_v16  ;;  %v625_v19 = vpop.f32.mrf.mxu1 }
 0x106   :  { %v1066_v20 = vpop.eup %1065  ;;  %754 = vst [vmem:[%s1512_s3 + $0x1a8] sm:$0xff] %v1064_v17  ;;  %1091 = vtanh.f32 %v634_v15  ;;  %v626_v21 = vadd.f32 %v1251_v34, %v625_v19 }
 0x107   :  { %v1068_v22 = vpop.eup %1067  ;;  %727 = vst [vmem:[%s1512_s3 + $0xd0] sm:$0xff] %v1066_v20  ;;  %1093 = vtanh.f32 %v498_v18 }
 0x108   :  { %v1070_v23 = vpop.eup %1069  ;;  %759 = vst [vmem:[%s1512_s3 + $0x1d0] sm:$0xff] %v1068_v22  ;;  %1095 = vtanh.f32 %v626_v21 }
 0x109   :  { %v1072_v24 = vpop.eup %1071  ;;  %725 = vst [vmem:[%s1512_s3 + $0xc0] sm:$0xff] %v1070_v23 }
 0x10a   :  { %v1074_v25 = vpop.eup %1073  ;;  %757 = vst [vmem:[%s1512_s3 + $0x1c0] sm:$0xff] %v1072_v24 }
 0x10b   :  { %v1076_v34 = vpop.eup %1075  ;;  %728 = vst [vmem:[%s1512_s3 + $0xd8] sm:$0xff] %v1074_v25 }
 0x10c   :  { %v1078_v26 = vpop.eup %1077  ;;  %760 = vst [vmem:[%s1512_s3 + $0x1d8] sm:$0xff] %v1076_v34 }
 0x10d   :  { %v1080_v27 = vpop.eup %1079  ;;  %726 = vst [vmem:[%s1512_s3 + $0xc8] sm:$0xff] %v1078_v26 }
 0x10e   :  { %v1082_v28 = vpop.eup %1081  ;;  %758 = vst [vmem:[%s1512_s3 + $0x1c8] sm:$0xff] %v1080_v27 }
 0x10f   :  { %v1084_v29 = vpop.eup %1083  ;;  %731 = vst [vmem:[%s1512_s3 + $0xf0] sm:$0xff] %v1082_v28 }
 0x110   :  { %v1086_v30 = vpop.eup %1085  ;;  %763 = vst [vmem:[%s1512_s3 + $0x1f0] sm:$0xff] %v1084_v29 }
 0x111   :  { %v1088_v31 = vpop.eup %1087  ;;  %729 = vst [vmem:[%s1512_s3 + $0xe0] sm:$0xff] %v1086_v30 }
 0x112   :  { %v1090_v32 = vpop.eup %1089  ;;  %761 = vst [vmem:[%s1512_s3 + $0x1e0] sm:$0xff] %v1088_v31 }
 0x113   :  { %v1092_v33 = vpop.eup %1091  ;;  %732 = vst [vmem:[%s1512_s3 + $0xf8] sm:$0xff] %v1090_v32 }
 0x114   :  { %v1094_v35 = vpop.eup %1093  ;;  %764 = vst [vmem:[%s1512_s3 + $0x1f8] sm:$0xff] %v1092_v33 }
 0x115   :  { %v1096_v36 = vpop.eup %1095  ;;  %730 = vst [vmem:[%s1512_s3 + $0xe8] sm:$0xff] %v1094_v35 }
 0x116   :  { %762 = vst [vmem:[%s1512_s3 + $0x1e8] sm:$0xff] %v1096_v36 }

</bundles_post_ra>
